<compile_context>
chip_gen: v6e
topology: v6e:2x2x1
jax: 0.10.0
libtpu: 0.0.40
codegen_flags: <defaults>
</compile_context>

<pallas_src>
import functools
import math

import jax
import jax.numpy as jnp
from jax import lax
from jax.experimental import pallas as pl
from jax.experimental.pallas import tpu as pltpu

_PAD = 128        # lane-dense feature padding (all feature dims <= 126 here)
_SELF_SLOT = 126  # padded-W column carrying W @ a_self  (=> h[:,126] = h @ a_self)
_ONE_SLOT = 127   # h column used to carry the softmax row-sum through the MXU


# ----------------------------- Pallas kernel --------------------------------


def _gat_fused_kernel(x_ref, mask_ref, m_ref, w_ref, a_ref,
                      a_pred_ref, r_out_ref, *, alpha, n_layers, emb):
    """One graph per grid step; all layers + head on VMEM-resident blocks.

    x_ref    : (N, 128)     f32  node features, zero-padded to 128 lanes
    mask_ref : (N, N)       f32  1.0 where adj > 0 else 0.0
    m_ref    : (N, N)       f32  topology weighting matrix M
    w_ref    : (L, 128, 128) bf16 padded W; column _SELF_SLOT holds W @ a_self
    a_ref    : (L, 8, 128)  f32  row 0 holds a_neigh (zero-padded)
    outputs  : A_pred (N, N) f32, r_out (N, 128) f32 (first `emb` lanes valid)
    """
    lane = lax.broadcasted_iota(jnp.int32, (1, _PAD), 1)
    ones_col = (lane == _ONE_SLOT).astype(jnp.float32)   # one-hot lane 127
    emb_mask = (lane < emb).astype(jnp.float32)

    def layer_body(layer, r):
        w = w_ref[layer]                        # (128, 128) bf16
        a_neigh = a_ref[layer][0:1, :]          # (1, 128)   f32
        mask = mask_ref[...]                    # (N, N)
        m = m_ref[...]                          # (N, N)

        # h = r @ W (bf16 operands, f32 accumulate). Column _SELF_SLOT of W
        # carries W @ a_self, so s_self is a free column of h.
        h = jnp.dot(r.astype(jnp.bfloat16), w,
                    preferred_element_type=jnp.float32)               # (N, 128)
        s_self = h[:, _SELF_SLOT:_SELF_SLOT + 1]                      # (N, 1)
        # (h @ a_neigh).T without a transpose: contract lane dims on the MXU.
        s_neigh = lax.dot_general(a_neigh, h, (((1,), (1,)), ((), ())),
                                  preferred_element_type=jnp.float32)  # (1, N)

        dense = (s_self + s_neigh) * m
        dense = jnp.maximum(dense, alpha * dense)                     # LeakyReLU

        # where(adj > 0, dense, -9e15) without a full-width select, then the
        # numerically stable (unnormalized) softmax numerator.
        logits = dense * mask + (mask - 1.0) * 9e15
        logits = logits - jnp.max(logits, axis=1, keepdims=True)
        e = jnp.exp(logits)                                           # (N, N)

        # Softmax row-sum rides the aggregation matmul: lane _ONE_SLOT of h is
        # guaranteed zero-padded, so h_aug carries an exact ones column and
        # hp[:, _ONE_SLOT] == sum_k e[:, k].
        h_aug = h + ones_col
        hp = jnp.dot(e, h_aug, preferred_element_type=jnp.float32)    # (N, 128)
        hp = hp * pl.reciprocal(hp[:, _ONE_SLOT:_ONE_SLOT + 1], approx=True)

        # ELU. Garbage in helper lanes 126/127 is annihilated by the next
        # layer's zero-padded W rows and masked out before the head.
        return jnp.where(hp > 0, hp, jnp.exp(jnp.minimum(hp, 0.0)) - 1.0)

    r = lax.fori_loop(0, n_layers, layer_body, x_ref[...])

    # Head: F.normalize(r, p=2, dim=1) via rsqrt, then sigmoid(r @ r.T).
    r = r * emb_mask                              # zero helper + padding lanes
    inv_norm = lax.rsqrt(
        jnp.maximum(jnp.sum(r * r, axis=1, keepdims=True), 1e-24))
    rn = r * inv_norm
    r_out_ref[...] = rn
    gram = lax.dot_general(rn, rn, (((1,), (1,)), ((), ())),
                           preferred_element_type=jnp.float32)
    a_pred_ref[...] = pl.reciprocal(1.0 + jnp.exp(-gram), approx=True)


# ------------------------------- Wrappers ------------------------------------


def _stack_params(params):
    """Pad weights to 128 lanes; fold W @ a_self into column _SELF_SLOT."""
    w_list, a_list = [], []
    for (W, a_self, a_neigh) in params:
        fi, fo = W.shape
        assert fi <= _PAD and fo <= _SELF_SLOT
        w_pad = jnp.zeros((_PAD, _PAD), jnp.float32)
        w_pad = w_pad.at[:fi, :fo].set(W)
        w_pad = w_pad.at[:fi, _SELF_SLOT].set((W @ a_self)[:, 0])
        a_pad = jnp.zeros((8, _PAD), jnp.float32)
        a_pad = a_pad.at[0, :fo].set(a_neigh[:, 0])
        w_list.append(w_pad)
        a_list.append(a_pad)
    # bf16 weights: MXU-native on all generations; accumulation stays f32.
    return jnp.stack(w_list).astype(jnp.bfloat16), jnp.stack(a_list)


@functools.partial(jax.jit, static_argnames=("alpha",))
def gat_forward(x, adj, M, params, alpha=0.2):
    """Batched forward. x: (B,N,F) or (N,F); adj / M: (B,N,N) or (N,N)."""
    squeeze = x.ndim == 2
    if squeeze:
        x, adj, M = x[None], adj[None], M[None]
    B, n, f_in = x.shape
    emb = params[-1][0].shape[1]
    n_layers = len(params)

    x_pad = jnp.pad(x.astype(jnp.float32), ((0, 0), (0, 0), (0, _PAD - f_in)))
    mask = (adj > 0).astype(jnp.float32)
    m_mat = M.astype(jnp.float32)
    w_stack, a_stack = _stack_params(params)

    kernel = functools.partial(_gat_fused_kernel, alpha=alpha,
                               n_layers=n_layers, emb=emb)

    flops = B * (n_layers * (2 * n * _PAD * _PAD        # r @ W
                             + 2 * n * _PAD             # a_neigh . h
                             + 2 * n * n * _PAD)        # e @ h_aug
                 + 2 * n * n * _PAD)                    # Gram
    transcendentals = B * (n_layers * (n * n + n * _PAD) + n * n)
    bytes_accessed = (x_pad.size * 4 + mask.size * 4 + m_mat.size * 4
                      + w_stack.size * 2 + a_stack.size * 4
                      + B * n * n * 4 + B * n * _PAD * 4)

    A_pred, r_pad = pl.pallas_call(
        kernel,
        out_shape=(jax.ShapeDtypeStruct((B, n, n), jnp.float32),     # A_pred
                   jax.ShapeDtypeStruct((B, n, _PAD), jnp.float32)),  # padded r
        grid=(B,),
        in_specs=[
            pl.BlockSpec((pl.Squeezed(), n, _PAD), lambda b: (b, 0, 0)),  # x
            pl.BlockSpec((pl.Squeezed(), n, n), lambda b: (b, 0, 0)),     # mask
            pl.BlockSpec((pl.Squeezed(), n, n), lambda b: (b, 0, 0)),     # M
            # Constant index_map -> weight DMAs are skipped after the first
            # grid step (weights stay VMEM-resident across graphs).
            pl.BlockSpec((n_layers, _PAD, _PAD), lambda b: (0, 0, 0)),
            pl.BlockSpec((n_layers, 8, _PAD), lambda b: (0, 0, 0)),
        ],
        out_specs=(
            pl.BlockSpec((pl.Squeezed(), n, n), lambda b: (b, 0, 0)),
            pl.BlockSpec((pl.Squeezed(), n, _PAD), lambda b: (b, 0, 0)),
        ),
        compiler_params=pltpu.CompilerParams(
            dimension_semantics=("parallel",)),
        cost_estimate=pl.CostEstimate(flops=flops,
                                      transcendentals=transcendentals,
                                      bytes_accessed=bytes_accessed),
    )(x_pad, mask, m_mat, w_stack, a_stack)

    r = r_pad[..., :emb]
    if squeeze:
        return A_pred[0], r[0]
    return A_pred, r


# ---------------------------- Parameter setup --------------------------------


def _xavier_uniform(key, shape, gain=1.414):
    fan_in, fan_out = shape[0], shape[1]
    bound = gain * math.sqrt(6.0 / (fan_in + fan_out))
    return jax.random.uniform(key, shape, jnp.float32, -bound, bound)


def init_gat_params(key, n_input, embedding_size, h1, h2, h3):
    dims = [(n_input, h1), (h1, h2), (h2, h3), (h3, embedding_size)]
    params = []
    for (fi, fo) in dims:
        key, kw, ks, kn = jax.random.split(key, 4)
        W = _xavier_uniform(kw, (fi, fo))
        a_self = _xavier_uniform(ks, (fo, 1))    # torch-shaped (F_out, 1)
        a_neigh = _xavier_uniform(kn, (fo, 1))
        params.append((W, a_self, a_neigh))
    return params


# --------------------------- Pure-JAX reference -------------------------------


def gat_reference(x, adj, M, params, alpha):
    """f32 reproduction of the torch forward (single graph)."""
    r = x
    for (W, a_self, a_neigh) in params:
        h = r @ W
        dense = (h @ a_self) + (h @ a_neigh).T
        dense = dense * M
        dense = jnp.where(dense > 0, dense, alpha * dense)
        logits = jnp.where(adj > 0, dense, -9e15)
        attention = jax.nn.softmax(logits, axis=1)
        r = jax.nn.elu(attention @ h)
    norm = jnp.sqrt(jnp.sum(r * r, axis=1, keepdims=True))
    rn = r / jnp.maximum(norm, 1e-12)
    return jax.nn.sigmoid(rn @ rn.T), rn


# --------------------------------- Main ---------------------------------------


if __name__ == "__main__":
    B, N = 2, 128        # batch of graphs (exercises the parallel grid axis)
    n_input = 32
    hidden_1 = 64
    hidden_2 = 32
    hidden_3 = 16
    embedding_size = 8
    alpha = 0.2

    key = jax.random.PRNGKey(0)
    k_x, k_adj, k_m, k_p = jax.random.split(key, 4)

    x = jax.random.normal(k_x, (B, N, n_input), jnp.float32)

    # Per-graph symmetric binary adjacency with self-loops (every row has >=1 edge).
    a = (jax.random.uniform(k_adj, (B, N, N)) < 0.1).astype(jnp.float32)
    eye = jnp.eye(N, dtype=jnp.float32)[None]
    adj = jnp.clip(a + jnp.swapaxes(a, -1, -2) + eye, 0.0, 1.0)

    # Topology weighting matrix M (positive, row-normalized over the support).
    m_raw = jax.random.uniform(k_m, (B, N, N), jnp.float32) * adj
    M = m_raw / jnp.maximum(jnp.sum(m_raw, axis=-1, keepdims=True), 1e-6)

    params = init_gat_params(k_p, n_input, embedding_size,
                             hidden_1, hidden_2, hidden_3)

    A_pred, r = gat_forward(x, adj, M, params, alpha=alpha)
    jax.block_until_ready((A_pred, r))

    assert A_pred.shape == (B, N, N)
    assert r.shape == (B, N, embedding_size)
    assert bool(jnp.all(jnp.isfinite(A_pred))) and bool(jnp.all(jnp.isfinite(r)))

    # Compare against the f32 reference. Tolerances reflect the deliberate
    # bf16 weight matmul and the EUP approximate reciprocals (softmax / sigmoid).
    for b in range(B):
        A_ref, r_ref = gat_reference(x[b], adj[b], M[b], params, alpha)
        assert float(jnp.max(jnp.abs(A_pred[b] - A_ref))) < 7.5e-2
        assert float(jnp.max(jnp.abs(r[b] - r_ref))) < 1.5e-1

    print("KERNEL_OK")
</pallas_src>

<mosaic_0001>
module attributes {stable_mosaic.version = 11 : i64} {
  func.func @_gat_fused_kernel(%arg0: i32, %arg1: memref<1x128x128xf32, #tpu.memory_space<vmem>>, %arg2: memref<1x128x128xf32, #tpu.memory_space<vmem>>, %arg3: memref<1x128x128xf32, #tpu.memory_space<vmem>>, %arg4: memref<4x128x128xbf16, #tpu.memory_space<vmem>>, %arg5: memref<4x8x128xf32, #tpu.memory_space<vmem>>, %arg6: memref<1x128x128xf32, #tpu.memory_space<vmem>>, %arg7: memref<1x128x128xf32, #tpu.memory_space<vmem>>) attributes {dimension_semantics = [#tpu.dimension_semantics<parallel>], iteration_bounds = array<i64: 2>, scalar_prefetch = 0 : i64, scratch_operands = 0 : i64, tpu.core_type = #tpu.core_type<tc>, window_params = [{transform_indices = @transform_0, window_bounds = array<i64: 1, 128, 128>}, {transform_indices = @transform_1, window_bounds = array<i64: 1, 128, 128>}, {transform_indices = @transform_2, window_bounds = array<i64: 1, 128, 128>}, {pipeline_mode = #tpu.pipeline_mode<synchronous>, transform_indices = @transform_3, window_bounds = array<i64: 4, 128, 128>}, {pipeline_mode = #tpu.pipeline_mode<synchronous>, transform_indices = @transform_4, window_bounds = array<i64: 4, 8, 128>}, {transform_indices = @transform_5, window_bounds = array<i64: 1, 128, 128>}, {transform_indices = @transform_6, window_bounds = array<i64: 1, 128, 128>}]} {
    %0 = tpu.iota {dimensions = array<i32: 1>} : vector<1x128xi32>
    %c127_i32 = arith.constant 127 : i32
    %1 = vector.broadcast %c127_i32 : i32 to vector<1x128xi32>
    %2 = arith.cmpi eq, %0, %1 : vector<1x128xi32>
    %3 = arith.extui %2 : vector<1x128xi1> to vector<1x128xi32>
    %4 = arith.sitofp %3 : vector<1x128xi32> to vector<1x128xf32>
    %c8_i32 = arith.constant 8 : i32
    %5 = vector.broadcast %c8_i32 : i32 to vector<1x128xi32>
    %6 = arith.cmpi slt, %0, %5 : vector<1x128xi32>
    %7 = arith.extui %6 : vector<1x128xi1> to vector<1x128xi32>
    %8 = arith.sitofp %7 : vector<1x128xi32> to vector<1x128xf32>
    %c0 = arith.constant 0 : index
    %c0_0 = arith.constant 0 : index
    %c0_1 = arith.constant 0 : index
    %9 = vector.load %arg1[%c0, %c0_0, %c0_1] : memref<1x128x128xf32, #tpu.memory_space<vmem>>, vector<1x128x128xf32>
    %10 = vector.shape_cast %9 : vector<1x128x128xf32> to vector<128x128xf32>
    %c0_i32 = arith.constant 0 : i32
    %c4_i32 = arith.constant 4 : i32
    %11 = arith.addi %c0_i32, %c4_i32 : i32
    %c1_i32 = arith.constant 1 : i32
    %12 = scf.for %arg8 = %c0_i32 to %11 step %c1_i32 iter_args(%arg9 = %10) -> (vector<128x128xf32>)  : i32 {
      %36 = arith.index_cast %arg8 : i32 to index
      %c0_13 = arith.constant 0 : index
      %c0_14 = arith.constant 0 : index
      %37 = vector.load %arg4[%36, %c0_13, %c0_14] : memref<4x128x128xbf16, #tpu.memory_space<vmem>>, vector<1x128x128xbf16>
      %38 = vector.shape_cast %37 : vector<1x128x128xbf16> to vector<128x128xbf16>
      %39 = arith.index_cast %arg8 : i32 to index
      %c0_15 = arith.constant 0 : index
      %c0_16 = arith.constant 0 : index
      %40 = vector.load %arg5[%39, %c0_15, %c0_16] : memref<4x8x128xf32, #tpu.memory_space<vmem>>, vector<1x8x128xf32>
      %41 = vector.shape_cast %40 : vector<1x8x128xf32> to vector<8x128xf32>
      %42 = vector.extract_strided_slice %41 {offsets = [0, 0], sizes = [1, 128], strides = [1, 1]} : vector<8x128xf32> to vector<1x128xf32>
      %c0_17 = arith.constant 0 : index
      %c0_18 = arith.constant 0 : index
      %c0_19 = arith.constant 0 : index
      %43 = vector.load %arg2[%c0_17, %c0_18, %c0_19] : memref<1x128x128xf32, #tpu.memory_space<vmem>>, vector<1x128x128xf32>
      %44 = vector.shape_cast %43 : vector<1x128x128xf32> to vector<128x128xf32>
      %c0_20 = arith.constant 0 : index
      %c0_21 = arith.constant 0 : index
      %c0_22 = arith.constant 0 : index
      %45 = vector.load %arg3[%c0_20, %c0_21, %c0_22] : memref<1x128x128xf32, #tpu.memory_space<vmem>>, vector<1x128x128xf32>
      %46 = vector.shape_cast %45 : vector<1x128x128xf32> to vector<128x128xf32>
      %47 = arith.truncf %arg9 : vector<128x128xf32> to vector<128x128xbf16>
      %cst_23 = arith.constant dense<0.000000e+00> : vector<128x128xf32>
      %48 = tpu.matmul %47, %38, %cst_23 {dimension_numbers = #tpu.dot_dimension_numbers<[1], [0], [0], [1], [0, 0, 1, 1], [], []>} : vector<128x128xbf16>, vector<128x128xbf16>, vector<128x128xf32> -> vector<128x128xf32>
      %49 = vector.extract_strided_slice %48 {offsets = [0, 126], sizes = [128, 1], strides = [1, 1]} : vector<128x128xf32> to vector<128x1xf32>
      %cst_24 = arith.constant dense<0.000000e+00> : vector<1x128xf32>
      %50 = tpu.matmul %42, %48, %cst_24 {dimension_numbers = #tpu.dot_dimension_numbers<[1], [1], [0], [0], [0, 0, 1, 0], [], []>} : vector<1x128xf32>, vector<128x128xf32>, vector<1x128xf32> -> vector<1x128xf32>
      %51 = vector.broadcast %49 : vector<128x1xf32> to vector<128x128xf32>
      %52 = vector.broadcast %50 : vector<1x128xf32> to vector<128x128xf32>
      %53 = arith.addf %51, %52 : vector<128x128xf32>
      %54 = arith.mulf %53, %46 : vector<128x128xf32>
      %cst_25 = arith.constant 2.000000e-01 : f32
      %55 = vector.broadcast %cst_25 : f32 to vector<128x128xf32>
      %56 = arith.mulf %55, %54 : vector<128x128xf32>
      %57 = arith.maximumf %54, %56 : vector<128x128xf32>
      %58 = arith.mulf %57, %44 : vector<128x128xf32>
      %cst_26 = arith.constant 1.000000e+00 : f32
      %59 = vector.broadcast %cst_26 : f32 to vector<128x128xf32>
      %60 = arith.subf %44, %59 : vector<128x128xf32>
      %cst_27 = arith.constant 9.000000e+15 : f32
      %61 = vector.broadcast %cst_27 : f32 to vector<128x128xf32>
      %62 = arith.mulf %60, %61 : vector<128x128xf32>
      %63 = arith.addf %58, %62 : vector<128x128xf32>
      %cst_28 = arith.constant dense<0xFF800000> : vector<128xf32>
      %64 = vector.multi_reduction <maximumf>, %63, %cst_28 [1] : vector<128x128xf32> to vector<128xf32>
      %65 = vector.shape_cast %64 : vector<128xf32> to vector<128x1xf32>
      %66 = vector.broadcast %65 : vector<128x1xf32> to vector<128x128xf32>
      %67 = arith.subf %63, %66 : vector<128x128xf32>
      %68 = math.exp %67 : vector<128x128xf32>
      %69 = vector.broadcast %4 : vector<1x128xf32> to vector<128x128xf32>
      %70 = arith.addf %48, %69 : vector<128x128xf32>
      %cst_29 = arith.constant dense<0.000000e+00> : vector<128x128xf32>
      %71 = tpu.matmul %68, %70, %cst_29 {dimension_numbers = #tpu.dot_dimension_numbers<[1], [0], [0], [1], [0, 0, 1, 1], [], []>} : vector<128x128xf32>, vector<128x128xf32>, vector<128x128xf32> -> vector<128x128xf32>
      %72 = vector.extract_strided_slice %71 {offsets = [0, 127], sizes = [128, 1], strides = [1, 1]} : vector<128x128xf32> to vector<128x1xf32>
      %73 = tpu.reciprocal %72 {approx = true} : vector<128x1xf32> -> vector<128x1xf32>
      %74 = vector.broadcast %73 : vector<128x1xf32> to vector<128x128xf32>
      %75 = arith.mulf %71, %74 : vector<128x128xf32>
      %cst_30 = arith.constant 0.000000e+00 : f32
      %76 = vector.broadcast %cst_30 : f32 to vector<128x128xf32>
      %77 = arith.cmpf ogt, %75, %76 : vector<128x128xf32>
      %cst_31 = arith.constant 0.000000e+00 : f32
      %78 = vector.broadcast %cst_31 : f32 to vector<128x128xf32>
      %79 = arith.minimumf %75, %78 : vector<128x128xf32>
      %80 = math.exp %79 : vector<128x128xf32>
      %cst_32 = arith.constant 1.000000e+00 : f32
      %81 = vector.broadcast %cst_32 : f32 to vector<128x128xf32>
      %82 = arith.subf %80, %81 : vector<128x128xf32>
      %83 = arith.select %77, %75, %82 : vector<128x128xi1>, vector<128x128xf32>
      scf.yield %83 : vector<128x128xf32>
    }
    %c4_i32_2 = arith.constant 4 : i32
    %13 = vector.broadcast %8 : vector<1x128xf32> to vector<128x128xf32>
    %14 = arith.mulf %12, %13 : vector<128x128xf32>
    %15 = arith.mulf %14, %14 : vector<128x128xf32>
    %cst = arith.constant dense<0.000000e+00> : vector<128xf32>
    %16 = vector.multi_reduction <add>, %15, %cst [1] : vector<128x128xf32> to vector<128xf32>
    %17 = vector.shape_cast %16 : vector<128xf32> to vector<128x1xf32>
    %cst_3 = arith.constant 1.000000e-24 : f32
    %18 = vector.broadcast %cst_3 : f32 to vector<128x1xf32>
    %19 = arith.maximumf %17, %18 : vector<128x1xf32>
    %20 = math.rsqrt %19 : vector<128x1xf32>
    %21 = vector.broadcast %20 : vector<128x1xf32> to vector<128x128xf32>
    %22 = arith.mulf %14, %21 : vector<128x128xf32>
    %c0_4 = arith.constant 0 : index
    %c0_5 = arith.constant 0 : index
    %c0_6 = arith.constant 0 : index
    %23 = vector.load %arg7[%c0_4, %c0_5, %c0_6] : memref<1x128x128xf32, #tpu.memory_space<vmem>>, vector<1x128x128xf32>
    %24 = vector.shape_cast %23 : vector<1x128x128xf32> to vector<128x128xf32>
    %25 = vector.shape_cast %22 : vector<128x128xf32> to vector<1x128x128xf32>
    tpu.vector_store %arg7[%c0_4, %c0_5, %c0_6], %25 {strides = array<i32>} : memref<1x128x128xf32, #tpu.memory_space<vmem>>, vector<1x128x128xf32>,
    %cst_7 = arith.constant dense<0.000000e+00> : vector<128x128xf32>
    %26 = tpu.matmul %22, %22, %cst_7 {dimension_numbers = #tpu.dot_dimension_numbers<[1], [1], [0], [0], [0, 0, 1, 0], [], []>} : vector<128x128xf32>, vector<128x128xf32>, vector<128x128xf32> -> vector<128x128xf32>
    %cst_8 = arith.constant 0.000000e+00 : f32
    %27 = vector.broadcast %cst_8 : f32 to vector<128x128xf32>
    %28 = arith.subf %27, %26 : vector<128x128xf32>
    %29 = math.exp %28 : vector<128x128xf32>
    %cst_9 = arith.constant 1.000000e+00 : f32
    %30 = vector.broadcast %cst_9 : f32 to vector<128x128xf32>
    %31 = arith.addf %30, %29 : vector<128x128xf32>
    %32 = tpu.reciprocal %31 {approx = true} : vector<128x128xf32> -> vector<128x128xf32>
    %c0_10 = arith.constant 0 : index
    %c0_11 = arith.constant 0 : index
    %c0_12 = arith.constant 0 : index
    %33 = vector.load %arg6[%c0_10, %c0_11, %c0_12] : memref<1x128x128xf32, #tpu.memory_space<vmem>>, vector<1x128x128xf32>
    %34 = vector.shape_cast %33 : vector<1x128x128xf32> to vector<128x128xf32>
    %35 = vector.shape_cast %32 : vector<128x128xf32> to vector<1x128x128xf32>
    tpu.vector_store %arg6[%c0_10, %c0_11, %c0_12], %35 {strides = array<i32>} : memref<1x128x128xf32, #tpu.memory_space<vmem>>, vector<1x128x128xf32>,
    return
  }
  func.func @transform_0(%arg0: i32) -> (i32, i32, i32) {
    %c0_i32 = arith.constant 0 : i32
    %c0_i32_0 = arith.constant 0 : i32
    %c0_i32_1 = arith.constant 0 : i32
    return %arg0, %c0_i32, %c0_i32_0 : i32, i32, i32
  }
  func.func @transform_1(%arg0: i32) -> (i32, i32, i32) {
    %c0_i32 = arith.constant 0 : i32
    %c0_i32_0 = arith.constant 0 : i32
    %c0_i32_1 = arith.constant 0 : i32
    return %arg0, %c0_i32, %c0_i32_0 : i32, i32, i32
  }
  func.func @transform_2(%arg0: i32) -> (i32, i32, i32) {
    %c0_i32 = arith.constant 0 : i32
    %c0_i32_0 = arith.constant 0 : i32
    %c0_i32_1 = arith.constant 0 : i32
    return %arg0, %c0_i32, %c0_i32_0 : i32, i32, i32
  }
  func.func @transform_3(%arg0: i32) -> (i32, i32, i32) {
    %c0_i32 = arith.constant 0 : i32
    %c0_i32_0 = arith.constant 0 : i32
    %c0_i32_1 = arith.constant 0 : i32
    %c0_i32_2 = arith.constant 0 : i32
    return %c0_i32, %c0_i32_0, %c0_i32_1 : i32, i32, i32
  }
  func.func @transform_4(%arg0: i32) -> (i32, i32, i32) {
    %c0_i32 = arith.constant 0 : i32
    %c0_i32_0 = arith.constant 0 : i32
    %c0_i32_1 = arith.constant 0 : i32
    %c0_i32_2 = arith.constant 0 : i32
    return %c0_i32, %c0_i32_0, %c0_i32_1 : i32, i32, i32
  }
  func.func @transform_5(%arg0: i32) -> (i32, i32, i32) {
    %c0_i32 = arith.constant 0 : i32
    %c0_i32_0 = arith.constant 0 : i32
    %c0_i32_1 = arith.constant 0 : i32
    return %arg0, %c0_i32, %c0_i32_0 : i32, i32, i32
  }
  func.func @transform_6(%arg0: i32) -> (i32, i32, i32) {
    %c0_i32 = arith.constant 0 : i32
    %c0_i32_0 = arith.constant 0 : i32
    %c0_i32_1 = arith.constant 0 : i32
    return %arg0, %c0_i32, %c0_i32_0 : i32, i32, i32
  }
}

</mosaic_0001>

<bundles_post_ra>
// kernel: gat_forward.1
= control target key start
LH: loop header
LB: loop body
LE: loop exit
PB: predicated region body
PF: predicated region fallthrough
CT: control target
= control target key end

     0   :  { %12 = vsyncpa [#allocation3], 0  ;;  %s3660_s0 = inlined_call_operand.vmem [shape: f32[2,128,128], index: 0, kind: input, shape index: {}]   ;;  %s3661_s1 = inlined_call_operand.vmem [shape: f32[2,128,128], index: 1, kind: input, shape index: {}]   ;;  %s3662_s2 = inlined_call_operand.vmem [shape: f32[2,128,128], index: 2, kind: input, shape index: {}]   ;;  %s3663_s3 = inlined_call_operand.vmem [shape: bf16[4,128,128], index: 3, kind: input, shape index: {}]   ;;  %s3664_s4 = inlined_call_operand.vmem [shape: f32[4,8,128], index: 4, kind: input, shape index: {}]   ;;  %s3665_s5 = inlined_call_operand.hbm [shape: f32[2,128,128], index: 5, kind: output, shape index: {0}]   ;;  %s3666_s6 = inlined_call_operand.vmem [shape: f32[2,128,128], index: 6, kind: output, shape index: {1}]  }
   0x1   :  { %14 = vsyncpa [#allocation3 + $0x1], 0  ;;  %s2851_s21 = smov 0   ;;  %s2853_s22 = smov 0  }
   0x2   :  { %s2855_s23 = smov 0   ;;  %s2857_s24 = smov 0  }
   0x3 LB: > { %s2872_s25 = sadd.s32 4294967295, %s2738_s24   ;;  %s1847_s26 = sadd.s32 4294967294, %s2738_s24   ;;  %s2738_s24 = sphi %s2857_s24, %s3697_s24   ;;  %s2734_s23 = sphi %s2855_s23, %s3696_s23   ;;  %s2730_s22 = sphi %s2853_s22, %s3695_s22   ;;  %s2726_s21 = sphi %s2851_s21, %s3694_s21  }
   0x4   : > { %s2876_s27 = sadd.s32 1, %s2738_s24   ;;  %s147_s28 = sadd.s32 1, %s2734_s23 }
   0x5   : > { %s144_s29 = ssub.s32 %s2738_s24, %s2876_s27  ;;  %p157_p0 = scmp.ne.s32.totalorder %s2734_s23, %s2730_s22 }
   0x6   : > { %p145_p1 = scmp.eq.s32.totalorder %s144_s29, 0  ;;  %p158_p2 = scmp.eq.s32.totalorder %s2872_s25, 1 }
   0x7   : > { %p163_p3 = scmp.ne.s32.totalorder %s2730_s22, %s2726_s21  ;;  %p164_p4 = scmp.eq.s32.totalorder %s1847_s26, 1 }
   0x8   : > { %s2887_s30 = scalar_select %p145_p1, %s2734_s23, %s147_s28  }
   0x9   : > { %p2889_p5 = por %p158_p2, %p157_p0  ;;  %p2893_p6 = por %p164_p4, %p163_p3 }
   0xa   : > { %p1850_p7 = scmp.ge.s32.totalorder %s2738_s24, 1  ;;  %p238_p8 = scmp.lt.s32.totalorder %s2738_s24, 3 }
   0xc   : > { %p239_p9 = pnand %p1850_p7, %p238_p8 }
   0xd   : > { %s273_s9 = sand.u32 (!%p239_p9), 1, %s2730_s22   ;;  %p283_p10 = scmp.lt.s32.totalorder (!%p239_p9), %s2872_s25, 1 }
   0xe   : > { %242 = sbr.rel (%p239_p9) target bundleno = 1593 (0x639), region = 40  ;;  %s1851_s10 = sshll.u32 (!%p239_p9), %s273_s9, 7 }
   0xf   : > { %s2927_s13 = scalar_lea.vmem (!%p239_p9), [#allocation2], %s1851_s10  ;;  %s2961_s10 = smov (!%p239_p9), 0  }
  0x13   : > { %v304_v0 = vlaneseq  ;;  %s284_s11 = scalar_select %p283_p10, %s2872_s25, 1  ;;  %v2808_v2 = vmov 0.0  }
  0x15   : > { %v305_v1 = vand.u32 127, %v304_v0  ;;  %s1910_s12 = sshll.u32 %s284_s11, 7 }
  0x16   : > { %s287_s15 = scalar_lea.vmem %s3660_s0, %s1910_s12  ;;  %s2915_s18 = scalar_lea.vmem %s3661_s1, %s1910_s12 }
  0x17   : > { %vm306_vm0 = vcmp.eq.s32.totalorder %v305_v1, 127  ;;  %vm309_vm1 = vcmp.lt.s32.totalorder %v305_v1, 8  ;;  %s2920_s26 = scalar_lea.vmem %s3662_s2, %s1910_s12  ;;  %s2925_s11 = scalar_lea.vmem %s3666_s6, %s1910_s12  ;;  %v312_v5 = vld [vmem:[%s287_s15] sm:$0xff]   ;;  %v313_v6 = vld [vmem:[%s287_s15 + $0x8] sm:$0xff]   ;;  %v314_v7 = vld [vmem:[%s287_s15 + $0x10] sm:$0xff]  }
  0x18   : > { %v2905_v3 = vsel %vm306_vm0, 1.0, %v2808_v2  ;;  %v2907_v4 = vsel %vm309_vm1, 1.0, %v2808_v2  ;;  %v315_v8 = vld [vmem:[%s287_s15 + $0x18] sm:$0xff]   ;;  %v316_v9 = vld [vmem:[%s287_s15 + $0x20] sm:$0xff]   ;;  %v317_v10 = vld [vmem:[%s287_s15 + $0x28] sm:$0xff]  }
  0x19   : > { %v318_v11 = vld [vmem:[%s287_s15 + $0x30] sm:$0xff]   ;;  %v319_v12 = vld [vmem:[%s287_s15 + $0x38] sm:$0xff]   ;;  %v320_v13 = vld [vmem:[%s287_s15 + $0x40] sm:$0xff]  }
  0x1a   : > { %v321_v14 = vld [vmem:[%s287_s15 + $0x48] sm:$0xff]   ;;  %v322_v15 = vld [vmem:[%s287_s15 + $0x50] sm:$0xff]   ;;  %v323_v16 = vld [vmem:[%s287_s15 + $0x58] sm:$0xff]  }
  0x1b   : > { %v324_v17 = vld [vmem:[%s287_s15 + $0x60] sm:$0xff]   ;;  %v325_v18 = vld [vmem:[%s287_s15 + $0x68] sm:$0xff]   ;;  %v326_v19 = vld [vmem:[%s287_s15 + $0x70] sm:$0xff]  }
  0x1c   : > { %v327_v20 = vld [vmem:[%s287_s15 + $0x78] sm:$0xff]  }
  0x1d LB: >> { %s1914_s12 = sshll.u32 %s2806_s10, 6  ;;  %v404_v21 = vpack.c.bf16 %v2798_v6, %v2802_v5  ;;  %v2809_v25 = vmov 126   ;;  %v405_v31 = vpack.c.bf16 %v2790_v8, %v2794_v7  ;;  %v406_v32 = vpack.c.bf16 %v2782_v10, %v2786_v9  ;;  %s1864_s17 = sshll.u32 %s2806_s10, 3  ;;  %s2806_s10 = sphi %s2961_s10, %s333_s10   ;;  %v2802_v5 = vphi %v312_v5, %v3693_v5   ;;  %v2798_v6 = vphi %v313_v6, %v3692_v6   ;;  %v2794_v7 = vphi %v314_v7, %v3691_v7   ;;  %v2790_v8 = vphi %v315_v8, %v3690_v8   ;;  %v2786_v9 = vphi %v316_v9, %v3689_v9   ;;  %v2782_v10 = vphi %v317_v10, %v3688_v10   ;;  %v2778_v11 = vphi %v318_v11, %v3687_v11   ;;  %v2774_v12 = vphi %v319_v12, %v3686_v12   ;;  %v2770_v13 = vphi %v320_v13, %v3685_v13   ;;  %v2766_v14 = vphi %v321_v14, %v3684_v14   ;;  %v2762_v15 = vphi %v322_v15, %v3683_v15   ;;  %v2758_v16 = vphi %v323_v16, %v3682_v16   ;;  %v2754_v17 = vphi %v324_v17, %v3681_v17   ;;  %v2750_v18 = vphi %v325_v18, %v3680_v18   ;;  %v2746_v19 = vphi %v326_v19, %v3679_v19   ;;  %v2742_v20 = vphi %v327_v20, %v3678_v20  }
  0x1e   : >> { %s352_s16 = scalar_lea.vmem %s3663_s3, %s1914_s12  ;;  %2407 = vset.pattern.permute.xlu1 %v2809_v25  ;;  %2406 = vset.pattern.permute.xlu0 %v2809_v25  ;;  %v407_v33 = vpack.c.bf16 %v2774_v12, %v2778_v11  ;;  %v408_v34 = vpack.c.bf16 %v2766_v14, %v2770_v13  ;;  %v409_v35 = vpack.c.bf16 %v2758_v16, %v2762_v15  ;;  %v2810_v38 = vmov 0.0   ;;  %s370_s28 = scalar_lea.vmem %s3664_s4, %s1864_s17 }
  0x1f   : >> { %v2410_v22 = vld [vmem:[%s352_s16 + $0x38] sm:$0xff]   ;;  %2029 = vmatprep.mubr.bf16.mxu0 %v404_v21  ;;  %v2411_v23 = vld [vmem:[%s352_s16 + $0x30] sm:$0xff]   ;;  %v2412_v24 = vld [vmem:[%s352_s16 + $0x28] sm:$0xff]   ;;  %v410_v36 = vpack.c.bf16 %v2750_v18, %v2754_v17  ;;  %v411_v37 = vpack.c.bf16 %v2742_v20, %v2746_v19  ;;  %2045 = vmatprep.subr.mxu1 %v2810_v38  ;;  %vm2811_vm2 = vmmov 0   ;;  %v708_v18 = vshrl.u32 %v304_v0, 7  ;;  %s333_s10 = sadd.s32 1, %s2806_s10  }
  0x20   : >> { %2013 = vmatprep.subr.bf16.mxu0 %v2410_v22  ;;  %v2413_v26 = vld [vmem:[%s352_s16 + $0x20] sm:$0xff]   ;;  %v2414_v27 = vld [vmem:[%s352_s16 + $0x18] sm:$0xff]   ;;  %v2415_v28 = vld [vmem:[%s352_s16 + $0x10] sm:$0xff]   ;;  %2077 = vmatprep.mubr.msk.f32.mxu1 %vm2811_vm2, %v2810_v38  ;;  %p3335_p11 = scmp.ge.s32.totalorder %s333_s10, 4  }
  0x21   : >> { %2014 = vmatpush3.bf16.msra.mxu0 %v2410_v22  ;;  %v2416_v29 = vld [vmem:[%s352_s16 + $0x8] sm:$0xff]   ;;  %v2417_v30 = vld [vmem:[%s352_s16] sm:$0xff]   ;;  %s2813_s15 = smov (%p3335_p11), [#allocation2]  }
  0x22   : >> { %2015 = vmatprep.subr.bf16.mxu0 %v2411_v23  ;;  %v371_v10 = vld [vmem:[%s370_s28] sm:$0xff]  ;;  %v3070_v19 = vld [vmem:[%s2915_s18 + $0x8] sm:$0xff]  ;;  %s2614_s16 = sshll.u32 (%p3335_p11), %s2813_s15, 4  ;;  %s2615_s16 = int_to_ptr.vmem [resolvable:$false] %s2614_s16 }
  0x23   : >> { %v3073_v20 = vld [vmem:[%s2915_s18] sm:$0xff]  ;;  %s2616_s17 = scalar_lea.vmem (%p3335_p11), %s2615_s16, 4096 }
  0x24   : >> { %v3076_v21 = vld [vmem:[%s2915_s18 + $0x20] sm:$0xff]  ;;  %v1873_v25 = vadd.f32 -1.0, %v3073_v20 }
  0x25   : >> { %2016 = vmatpush3.bf16.msra.mxu0 %v2411_v23  ;;  %v709_v23 = vsub.s32 0, %v708_v18 }
  0x26   : >> { %2017 = vmatprep.subr.bf16.mxu0 %v2412_v24 }
  0x29   : >> { %2018 = vmatpush3.bf16.msra.mxu0 %v2412_v24  ;;  %v1874_v24 = vadd.f32 -1.0, %v3070_v19 }
  0x2a   : >> { %2019 = vmatprep.subr.bf16.mxu0 %v2413_v26 }
  0x2d   : >> { %2020 = vmatpush3.bf16.msra.mxu0 %v2413_v26  ;;  %v1877_v26 = vadd.f32 -1.0, %v3076_v21 }
  0x2e   : >> { %2021 = vmatprep.subr.bf16.mxu0 %v2414_v27 }
  0x31   : >> { %2022 = vmatpush3.bf16.msra.mxu0 %v2414_v27  ;;  %v3082_v27 = vld [vmem:[%s2915_s18 + $0x10] sm:$0xff] }
  0x32   : >> { %2023 = vmatprep.subr.bf16.mxu0 %v2415_v28 }
  0x35   : >> { %2024 = vmatpush3.bf16.msra.mxu0 %v2415_v28  ;;  %v3085_v28 = vld [vmem:[%s2915_s18 + $0x30] sm:$0xff] }
  0x36   : >> { %2025 = vmatprep.subr.bf16.mxu0 %v2416_v29 }
  0x39   : >> { %2026 = vmatpush3.bf16.msra.mxu0 %v2416_v29  ;;  %v3088_v29 = vld [vmem:[%s2915_s18 + $0x18] sm:$0xff] }
  0x3a   : >> { %2027 = vmatprep.subr.bf16.mxu0 %v2417_v30 }
  0x3d   : >> { %2028 = vmatpush3.bf16.msra.mxu0 %v2417_v30 }
  0x40   : >> { %2030 = vmatmul.mubr.bf16.vlgmr.msra.gmra.mxu0 %v405_v31 }
  0x41   : >> { %2033 = vmatprep.mubr.bf16.mxu0 %v406_v32  ;;  %v389_v32 = vld [vmem:[%s2920_s26 + $0x8] sm:$0xff] }
  0x48   : >> { %2034 = vmatmul.mubr.bf16.gmra.mxu0 %v407_v33  ;;  %v388_v33 = vld [vmem:[%s2920_s26] sm:$0xff] }
  0x49   : >> { %2037 = vmatprep.mubr.bf16.mxu0 %v408_v34 }
  0x50   : >> { %2038 = vmatmul.mubr.bf16.gmra.mxu0 %v409_v35  ;;  %v392_v35 = vld [vmem:[%s2920_s26 + $0x20] sm:$0xff] }
  0x51   : >> { %2041 = vmatprep.mubr.bf16.mxu0 %v410_v36  ;;  %v390_v36 = vld [vmem:[%s2920_s26 + $0x10] sm:$0xff] }
  0x58   : >> { %2042 = vmatmul.mubr.bf16.gmra.mxu0 %v411_v37  ;;  %v1875_v37 = vadd.f32 -1.0, %v3082_v27 }
 0x100   : >> { %v2988_v39 = vpop.f32.mrf.mxu0 }
 0x101   : >> { %639 = vperm.xlu1 %2407, %v2988_v39   ;;  %v921_v7 = vadd.f32 %v2988_v39, %v2905_v3 }
 0x102   : >> { %v2991_v40 = vpop.f32.mrf.mxu0 }
 0x103   : >> { %629 = vperm.xlu0 %2406, %v2991_v40   ;;  %v919_v9 = vadd.f32 %v2905_v3, %v2991_v40 }
 0x104   : >> { %v2994_v41 = vpop.f32.mrf.mxu0 }
 0x105   : >> { %644 = vperm.xlu1 %2407, %v2994_v41   ;;  %v922_v6 = vadd.f32 %v2994_v41, %v2905_v3 }
 0x106   : >> { %v2997_v42 = vpop.f32.mrf.mxu0 }
 0x107   : >> { %634 = vperm.xlu0 %2406, %v2997_v42   ;;  %v920_v8 = vadd.f32 %v2905_v3, %v2997_v42 }
 0x108   : >> { %v3000_v43 = vpop.f32.mrf.mxu0 }
 0x109   : >> { %v925_v1 = vadd.f32 %v3000_v43, %v2905_v3 }
 0x10a   : >> { %v3002_v44 = vpop.f32.mrf.mxu0 }
 0x10b   : >> { %649 = vperm.xlu0 %2406, %v3002_v44   ;;  %v923_v5 = vadd.f32 %v2905_v3, %v3002_v44 }
 0x10c   : >> { %v3005_v45 = vpop.f32.mrf.mxu0 }
 0x10d   : >> { %v926_v63 = vadd.f32 %v3005_v45, %v2905_v3 }
 0x10e   : >> { %v3007_v46 = vpop.f32.mrf.mxu0 }
 0x10f   : >> { %659 = vperm.xlu0 %2406, %v3000_v43   ;;  %654 = vperm.xlu1 %2407, %v3007_v46   ;;  %v924_v2 = vadd.f32 %v2905_v3, %v3007_v46 }
 0x110   : >> { %v2039_v47 = vpop.f32.mrf.mxu0 }
 0x111   : >> { %v929_v60 = vadd.f32 %v2039_v47, %v2905_v3 }
 0x112   : >> { %v3011_v48 = vpop.f32.mrf.mxu0 }
 0x113   : >> { %664 = vperm.xlu1 %2407, %v3005_v45   ;;  %669 = vperm.xlu0 %2406, %v3011_v48   ;;  %v927_v62 = vadd.f32 %v2905_v3, %v3011_v48 }
 0x114   : >> { %v2040_v49 = vpop.f32.mrf.mxu0 }
 0x115   : >> { %v930_v59 = vadd.f32 %v2040_v49, %v2905_v3 }
 0x116   : >> { %v529_v50 = vpop.f32.mrf.mxu0 }
 0x117   : >> { %679 = vperm.xlu0 %2406, %v2039_v47   ;;  %674 = vperm.xlu1 %2407, %v529_v50   ;;  %v928_v61 = vadd.f32 %v2905_v3, %v529_v50 }
 0x118   : >> { %v2043_v51 = vpop.f32.mrf.mxu0 }
 0x119   : >> { %v933_v56 = vadd.f32 %v2043_v51, %v2905_v3 }
 0x11a   : >> { %v542_v52 = vpop.f32.mrf.mxu0 }
 0x11b   : >> { %684 = vperm.xlu1 %2407, %v2040_v49   ;;  %689 = vperm.xlu0 %2406, %v542_v52   ;;  %v931_v58 = vadd.f32 %v2905_v3, %v542_v52 }
 0x11c   : >> { %v2044_v53 = vpop.f32.mrf.mxu0 }
 0x11d   : >> { %v934_v54 = vadd.f32 %v2044_v53, %v2905_v3  ;;  %2046 = vmatpush3.xpose.msra.mxu1 %v2044_v53 }
 0x11e   : >> { %v545_v55 = vpop.f32.mrf.mxu0  ;;  %2047 = vmatprep.subr.mxu1 %v2810_v38 }
 0x11f   : >> { %699 = vperm.xlu0 %2406, %v2043_v51   ;;  %2080 = vmatprep.subr.mxu0 %v934_v54  ;;  %v932_v57 = vadd.f32 %v2905_v3, %v545_v55 }
 0x120   : >> { %694 = vperm.xlu1 %2407, %v545_v55   ;;  %2081 = vmatpush3.msra.mxu0 %v934_v54 }
 0x121   : >> { %2048 = vmatpush3.xpose.msra.mxu1 %v2043_v51  ;;  %2082 = vmatprep.subr.mxu0 %v933_v56  ;;  %v3108_v51 = vld [vmem:[%s2915_s18 + $0x40] sm:$0xff] }
 0x122   : >> { %2083 = vmatpush3.msra.mxu0 %v933_v56  ;;  %2049 = vmatprep.subr.mxu1 %v2810_v38  ;;  %v393_v56 = vld [vmem:[%s2920_s26 + $0x28] sm:$0xff] }
 0x123   : >> { %2084 = vmatprep.subr.mxu0 %v932_v57 }
 0x124   : >> { %704 = vperm.xlu1 %2407, %v2044_v53   ;;  %2085 = vmatpush3.msra.mxu0 %v932_v57 }
 0x125   : >> { %2050 = vmatpush3.xpose.msra.mxu1 %v545_v55  ;;  %2086 = vmatprep.subr.mxu0 %v931_v58 }
 0x126   : >> { %2087 = vmatpush3.msra.mxu0 %v931_v58  ;;  %2051 = vmatprep.subr.mxu1 %v2810_v38 }
 0x127   : >> { %2088 = vmatprep.subr.mxu0 %v930_v59 }
 0x128   : >> { %2089 = vmatpush3.msra.mxu0 %v930_v59 }
 0x129   : >> { %2052 = vmatpush3.xpose.msra.mxu1 %v542_v52  ;;  %2090 = vmatprep.subr.mxu0 %v929_v60  ;;  %v396_v52 = vld [vmem:[%s2920_s26 + $0x40] sm:$0xff] }
 0x12a   : >> { %2091 = vmatpush3.msra.mxu0 %v929_v60  ;;  %2053 = vmatprep.subr.mxu1 %v2810_v38 }
 0x12b   : >> { %2092 = vmatprep.subr.mxu0 %v928_v61 }
 0x12c   : >> { %2093 = vmatpush3.msra.mxu0 %v928_v61 }
 0x12d   : >> { %2054 = vmatpush3.xpose.msra.mxu1 %v2040_v49  ;;  %2094 = vmatprep.subr.mxu0 %v927_v62 }
 0x12e   : >> { %2095 = vmatpush3.msra.mxu0 %v927_v62  ;;  %2055 = vmatprep.subr.mxu1 %v2810_v38 }
 0x12f   : >> { %2096 = vmatprep.subr.mxu0 %v926_v63 }
 0x130   : >> { %2097 = vmatpush3.msra.mxu0 %v926_v63 }
 0x131   : >> { %2056 = vmatpush3.xpose.msra.mxu1 %v2039_v47  ;;  %2098 = vmatprep.subr.mxu0 %v925_v1 }
 0x132   : >> { %2099 = vmatpush3.msra.mxu0 %v925_v1  ;;  %2057 = vmatprep.subr.mxu1 %v2810_v38 }
 0x133   : >> { %2100 = vmatprep.subr.mxu0 %v924_v2 }
 0x134   : >> { %2101 = vmatpush3.msra.mxu0 %v924_v2 }
 0x135   : >> { %2058 = vmatpush3.xpose.msra.mxu1 %v529_v50  ;;  %2102 = vmatprep.subr.mxu0 %v923_v5  ;;  %v391_v50 = vld [vmem:[%s2920_s26 + $0x18] sm:$0xff] }
 0x136   : >> { %2103 = vmatpush3.msra.mxu0 %v923_v5  ;;  %2059 = vmatprep.subr.mxu1 %v2810_v38  ;;  %v1881_v5 = vadd.f32 -1.0, %v3108_v51 }
 0x137   : >> { %2104 = vmatprep.subr.mxu0 %v922_v6 }
 0x138   : >> { %2105 = vmatpush3.msra.mxu0 %v922_v6 }
 0x139   : >> { %2060 = vmatpush3.xpose.msra.mxu1 %v3011_v48  ;;  %2106 = vmatprep.subr.mxu0 %v921_v7 }
 0x13a   : >> { %2107 = vmatpush3.msra.mxu0 %v921_v7  ;;  %2061 = vmatprep.subr.mxu1 %v2810_v38 }
 0x13b   : >> { %2108 = vmatprep.subr.mxu0 %v920_v8 }
 0x13c   : >> { %2109 = vmatpush3.msra.mxu0 %v920_v8 }
 0x13d   : >> { %2062 = vmatpush3.xpose.msra.mxu1 %v3005_v45  ;;  %2110 = vmatprep.subr.mxu0 %v919_v9 }
 0x13e   : >> { %2111 = vmatpush3.msra.mxu0 %v919_v9  ;;  %2063 = vmatprep.subr.mxu1 %v2810_v38 }
 0x141   : >> { %2064 = vmatpush3.xpose.msra.mxu1 %v3000_v43  ;;  %v807_v43 = vmul.f32 9e+15, %v1873_v25 }
 0x142   : >> { %2065 = vmatprep.subr.mxu1 %v2810_v38 }
 0x145   : >> { %2066 = vmatpush3.xpose.msra.mxu1 %v3007_v46 }
 0x146   : >> { %2067 = vmatprep.subr.mxu1 %v2810_v38 }
 0x149   : >> { %2068 = vmatpush3.xpose.msra.mxu1 %v3002_v44  ;;  %v3100_v44 = vmul.f32 9e+15, %v1877_v26 }
 0x14a   : >> { %2069 = vmatprep.subr.mxu1 %v2810_v38 }
 0x14d   : >> { %2070 = vmatpush3.xpose.msra.mxu1 %v2994_v41 }
 0x14e   : >> { %2071 = vmatprep.subr.mxu1 %v2810_v38 }
 0x151   : >> { %2072 = vmatpush3.xpose.msra.mxu1 %v2988_v39  ;;  %v1879_v39 = vadd.f32 -1.0, %v3085_v28 }
 0x152   : >> { %2073 = vmatprep.subr.mxu1 %v2810_v38 }
 0x155   : >> { %2074 = vmatpush3.xpose.msra.mxu1 %v2997_v42  ;;  %v808_v42 = vmul.f32 9e+15, %v1874_v24 }
 0x156   : >> { %2075 = vmatprep.subr.mxu1 %v2810_v38  ;;  %v394_v38 = vld [vmem:[%s2920_s26 + $0x30] sm:$0xff] }
 0x159   : >> { %2076 = vmatpush3.xpose.msra.mxu1 %v2991_v40  ;;  %v1876_v40 = vadd.f32 -1.0, %v3088_v29 }
 0x15c   : >> { %2078 = vmatmul.mubr.f32.vlgmr.msra.gmra.mxu1 %v371_v10 }
 0x17c   : >> { %v640_v13 = vpop.permute.xlu1 %639 }
 0x17e   : >> { %v630_v11 = vpop.permute.xlu0 %629 }
 0x180   : >> { %v645_v15 = vpop.permute.xlu1 %644 }
 0x182   : >> { %v635_v12 = vpop.permute.xlu0 %634 }
 0x186   : >> { %v650_v14 = vpop.permute.xlu0 %649 }
 0x18a   : >> { %v660_v16 = vpop.permute.xlu0 %659  ;;  %v655_v17 = vpop.permute.xlu1 %654 }
 0x18e   : >> { %v670_v22 = vpop.permute.xlu0 %669  ;;  %v665_v30 = vpop.permute.xlu1 %664 }
 0x192   : >> { %v680_v45 = vpop.permute.xlu0 %679  ;;  %v675_v58 = vpop.permute.xlu1 %674 }
 0x196   : >> { %v685_v25 = vpop.permute.xlu1 %684 }
 0x21c   : >> { %v623_v31 = vpop.f32.mrf.mxu1 }
 0x21d   : >> { %v3092_v34 = vrot.slane %v623_v31, %v709_v23 }
 0x21e   : >> { %v2079_v41 = vpop.f32.mrf.mxu1 }
 0x21f   : >> { %v712_v46 = vadd.f32 %v3092_v34, %v635_v12  ;;  %v711_v47 = vadd.f32 %v3092_v34, %v630_v11  ;;  %v715_v48 = vadd.f32 %v3092_v34, %v650_v14  ;;  %v713_v49 = vadd.f32 %v3092_v34, %v640_v13  ;;  %v690_v13 = vpop.permute.xlu0 %689 }
 0x220   : >> { %v717_v53 = vadd.f32 %v3092_v34, %v660_v16  ;;  %v714_v54 = vadd.f32 %v3092_v34, %v645_v15  ;;  %v719_v55 = vadd.f32 %v3092_v34, %v670_v22  ;;  %v716_v57 = vadd.f32 %v3092_v34, %v655_v17 }
 0x221   : >> { %v728_v59 = vmul.f32 %v712_v46, %v389_v32  ;;  %v727_v60 = vmul.f32 %v711_v47, %v388_v33  ;;  %v731_v61 = vmul.f32 %v715_v48, %v392_v35  ;;  %v729_v62 = vmul.f32 %v713_v49, %v390_v36  ;;  %v377_v32 = vld [vmem:[%s2915_s18 + $0x28] sm:$0xff]  ;;  %v395_v46 = vld [vmem:[%s2920_s26 + $0x38] sm:$0xff] }
 0x222   : >> { %v733_v63 = vmul.f32 %v717_v53, %v394_v38  ;;  %v730_v1 = vmul.f32 %v714_v54, %v391_v50  ;;  %v3116_v2 = vmul.f32 %v719_v55, %v396_v52  ;;  %v3119_v9 = vmul.f32 %v716_v57, %v393_v56  ;;  %v379_v52 = vld [vmem:[%s2915_s18 + $0x38] sm:$0xff]  ;;  %v400_v53 = vld [vmem:[%s2920_s26 + $0x60] sm:$0xff]  ;;  %v695_v57 = vpop.permute.xlu1 %694 }
 0x223   : >> { %v744_v6 = vmul.f32 0.2, %v728_v59  ;;  %v743_v7 = vmul.f32 0.2, %v727_v60  ;;  %v747_v8 = vmul.f32 0.2, %v731_v61  ;;  %v721_v17 = vadd.f32 %v3092_v34, %v680_v45  ;;  %v700_v50 = vpop.permute.xlu0 %699 }
 0x224   : >> { %v745_v10 = vmul.f32 0.2, %v729_v62  ;;  %v749_v11 = vmul.f32 0.2, %v733_v63  ;;  %v746_v12 = vmul.f32 0.2, %v730_v1  ;;  %v718_v35 = vadd.f32 %v3092_v34, %v665_v30 }
 0x225   : >> { %v760_v14 = vmax.f32 %v728_v59, %v744_v6  ;;  %v759_v15 = vmax.f32 %v727_v60, %v743_v7  ;;  %v763_v16 = vmax.f32 %v731_v61, %v747_v8  ;;  %v751_v24 = vmul.f32 0.2, %v3116_v2  ;;  %v398_v45 = vld [vmem:[%s2920_s26 + $0x50] sm:$0xff]  ;;  %v399_v6 = vld [vmem:[%s2920_s26 + $0x58] sm:$0xff] }
 0x226   : >> { %v761_v18 = vmax.f32 %v729_v62, %v745_v10  ;;  %v765_v22 = vmax.f32 %v733_v63, %v749_v11  ;;  %v762_v23 = vmax.f32 %v730_v1, %v746_v12  ;;  %v748_v33 = vmul.f32 0.2, %v3119_v9  ;;  %v402_v62 = vld [vmem:[%s2920_s26 + $0x70] sm:$0xff]  ;;  %v384_v12 = vld [vmem:[%s2915_s18 + $0x60] sm:$0xff] }
 0x227   : >> { %v776_v26 = vmul.f32 %v760_v14, %v3070_v19  ;;  %v775_v31 = vmul.f32 %v759_v15, %v3073_v20  ;;  %v779_v36 = vmul.f32 %v763_v16, %v3076_v21  ;;  %v809_v38 = vmul.f32 9e+15, %v1875_v37 }
 0x228   : >> { %v813_v41 = vmul.f32 9e+15, %v1879_v39  ;;  %v777_v19 = vmul.f32 %v761_v18, %v3082_v27  ;;  %v810_v20 = vmul.f32 9e+15, %v1876_v40  ;;  %v781_v49 = vmul.f32 %v765_v22, %v3085_v28  ;;  %v382_v39 = vld [vmem:[%s2915_s18 + $0x50] sm:$0xff]  ;;  %v397_v28 = vld [vmem:[%s2920_s26 + $0x48] sm:$0xff] }
 0x229   : >> { %v3131_v47 = vadd.f32 %v808_v42, %v776_v26  ;;  %v3133_v48 = vadd.f32 %v807_v43, %v775_v31  ;;  %v778_v30 = vmul.f32 %v762_v23, %v3088_v29  ;;  %v767_v21 = vmax.f32 %v3116_v2, %v751_v24  ;;  %v401_v23 = vld [vmem:[%s2920_s26 + $0x68] sm:$0xff] }
 0x22a   : >> { %v1878_v37 = vadd.f32 -1.0, %v377_v32  ;;  %v815_v42 = vmul.f32 9e+15, %v1881_v5  ;;  %v764_v43 = vmax.f32 %v3119_v9, %v748_v33  ;;  %v737_v27 = vmul.f32 %v721_v17, %v398_v45 }
 0x22b   : >> { %841 = vmax.xlane.f32.xlu1 %v3131_v47  ;;  %839 = vmax.xlane.f32.xlu0 %v3133_v48  ;;  %v734_v40 = vmul.f32 %v718_v35, %v395_v46  ;;  %v3147_v29 = vadd.f32 %v3100_v44, %v779_v36  ;;  %v723_v54 = vadd.f32 %v3092_v34, %v690_v13  ;;  %v1883_v1 = vadd.f32 -1.0, %v382_v39  ;;  %v381_v13 = vld [vmem:[%s2915_s18 + $0x48] sm:$0xff]  ;;  %v386_v36 = vld [vmem:[%s2915_s18 + $0x70] sm:$0xff] }
 0x22c   : >> { %v720_v55 = vadd.f32 %v3092_v34, %v675_v58  ;;  %v725_v56 = vadd.f32 %v3092_v34, %v700_v50  ;;  %v3152_v59 = vadd.f32 %v809_v38, %v777_v19  ;;  %v753_v60 = vmul.f32 0.2, %v737_v27 }
 0x22d   : >> { %v750_v61 = vmul.f32 0.2, %v734_v40  ;;  %v722_v63 = vadd.f32 %v3092_v34, %v685_v25  ;;  %v1880_v2 = vadd.f32 -1.0, %v379_v52  ;;  %v739_v44 = vmul.f32 %v723_v54, %v400_v53 }
 0x22e   : >> { %v736_v5 = vmul.f32 %v720_v55, %v397_v28  ;;  %v3159_v58 = vadd.f32 %v813_v41, %v781_v49  ;;  %v783_v7 = vmul.f32 %v767_v21, %v3108_v51  ;;  %v780_v8 = vmul.f32 %v764_v43, %v377_v32  ;;  %v705_v51 = vpop.permute.xlu1 %704  ;;  %v383_v41 = vld [vmem:[%s2915_s18 + $0x58] sm:$0xff]  ;;  %v385_v55 = vld [vmem:[%s2915_s18 + $0x68] sm:$0xff] }
 0x22f   : >> { %847 = vmax.xlane.f32.xlu1 %v3147_v29  ;;  %843 = vmax.xlane.f32.xlu0 %v3152_v59  ;;  %v812_v9 = vmul.f32 9e+15, %v1878_v37  ;;  %v3162_v10 = vadd.f32 %v810_v20, %v778_v30  ;;  %v769_v11 = vmax.f32 %v737_v27, %v753_v60  ;;  %v741_v14 = vmul.f32 %v725_v56, %v402_v62  ;;  %v403_v21 = vld [vmem:[%s2920_s26 + $0x78] sm:$0xff]  ;;  %s1676_s26 = sshll.u32 (%p3335_p11), %s2927_s13, 4  ;;  %s3613_s26 = int_to_ptr.vmem [resolvable:$true] %s1676_s26 }
 0x230   : >> { %v724_v15 = vadd.f32 %v3092_v34, %v695_v57  ;;  %v766_v16 = vmax.f32 %v734_v40, %v750_v61  ;;  %v755_v17 = vmul.f32 0.2, %v739_v44  ;;  %v752_v18 = vmul.f32 0.2, %v736_v5  ;;  %s2610_s14 = scalar_lea.vmem (%p3335_p11), %s3613_s26, 2048  ;;  %p2617_p1 = scmp.lt.s32.totalorder (%p3335_p11), %s3613_s26, %s2615_s16 }
 0x231   : >> { %v738_v22 = vmul.f32 %v722_v63, %v399_v6  ;;  %v817_v24 = vmul.f32 9e+15, %v1883_v1  ;;  %v814_v25 = vmul.f32 9e+15, %v1880_v2  ;;  %v3170_v26 = vadd.f32 %v815_v42, %v783_v7  ;;  %p2611_p12 = scmp.ne.s32.totalorder (%p3335_p11), %s3613_s26, %s2610_s14  ;;  %p2618_p2 = scmp.lt.s32.totalorder (%p3335_p11), %s2616_s17, %s2610_s14 }
 0x232   : >> { %v3172_v31 = vadd.f32 %v812_v9, %v780_v8  ;;  %v1885_v32 = vadd.f32 -1.0, %v384_v12  ;;  %v1882_v33 = vadd.f32 -1.0, %v381_v13  ;;  %v785_v35 = vmul.f32 %v769_v11, %v382_v39 }
 0x233   : >> { %851 = vmax.xlane.f32.xlu1 %v3159_v58  ;;  %845 = vmax.xlane.f32.xlu0 %v3162_v10  ;;  %v757_v38 = vmul.f32 0.2, %v741_v14  ;;  %v740_v45 = vmul.f32 %v724_v15, %v401_v23  ;;  %v726_v46 = vadd.f32 %v3092_v34, %v705_v51  ;;  %v782_v19 = vmul.f32 %v766_v16, %v379_v52  ;;  %p2612_p13 = pnand (%p3335_p11), %p2611_p12, %p2889_p5  ;;  %p2619_p3 = por (%p3335_p11), %p2618_p2, %p2617_p1 }
 0x234   : >> { %v771_v20 = vmax.f32 %v739_v44, %v755_v17  ;;  %v768_v49 = vmax.f32 %v736_v5, %v752_v18  ;;  %v754_v30 = vmul.f32 0.2, %v738_v22  ;;  %v819_v37 = vmul.f32 9e+15, %v1885_v32  ;;  %v387_v5 = vld [vmem:[%s2915_s18 + $0x78] sm:$0xff]  ;;  %s1915_s18 = sshll.u32 (%p3335_p11), %s2872_s25, 11 }
 0x235   : >> { %v816_v50 = vmul.f32 9e+15, %v1882_v33  ;;  %v1887_v42 = vadd.f32 -1.0, %v386_v36  ;;  %v1884_v39 = vadd.f32 -1.0, %v383_v41  ;;  %v3180_v43 = vadd.f32 %v817_v24, %v785_v35  ;;  %s3611_s12 = scalar_lea.hbm (%p3335_p11), %s3665_s5, %s1915_s18  ;;  %s3620_s25 = scalar_lea.sflag (%p3335_p11), [#allocation3], %s273_s9 }
 0x236   : >> { %v773_v27 = vmax.f32 %v741_v14, %v757_v38  ;;  %v756_v40 = vmul.f32 0.2, %v740_v45  ;;  %v742_v53 = vmul.f32 %v726_v46, %v403_v21  ;;  %v3182_v34 = vadd.f32 %v814_v25, %v782_v19  ;;  %p2613_p0 = pneg (%p3335_p11), %p2612_p13 }
 0x237   : >> { %855 = vmax.xlane.f32.xlu1 %v3170_v26  ;;  %849 = vmax.xlane.f32.xlu0 %v3172_v31  ;;  %v787_v52 = vmul.f32 %v771_v20, %v384_v12  ;;  %v784_v28 = vmul.f32 %v768_v49, %v381_v13  ;;  %v770_v54 = vmax.f32 %v738_v22, %v754_v30  ;;  %v821_v56 = vmul.f32 9e+15, %v1887_v42 }
 0x238   : >> { %v789_v57 = vmul.f32 %v773_v27, %v386_v36  ;;  %v818_v60 = vmul.f32 9e+15, %v1884_v39  ;;  %v1886_v61 = vadd.f32 -1.0, %v385_v55  ;;  %v758_v62 = vmul.f32 0.2, %v742_v53  ;;  %p2620_p4 = pnand (%p3335_p11), %p2619_p3, %p2613_p0 }
 0x239   : >> { %v3187_v63 = vadd.f32 %v819_v37, %v787_v52  ;;  %v3189_v1 = vadd.f32 %v816_v50, %v784_v28  ;;  %v786_v2 = vmul.f32 %v770_v54, %v383_v41  ;;  %v772_v44 = vmax.f32 %v740_v45, %v756_v40 }
 0x23a   : >> { %v820_v6 = vmul.f32 9e+15, %v1886_v61  ;;  %v1888_v7 = vadd.f32 -1.0, %v387_v5  ;;  %v3194_v8 = vadd.f32 %v821_v56, %v789_v57  ;;  %v774_v12 = vmax.f32 %v742_v53, %v758_v62 }
 0x23b   : >> { %859 = vmax.xlane.f32.xlu1 %v3180_v43  ;;  %853 = vmax.xlane.f32.xlu0 %v3182_v34  ;;  %v3196_v9 = vadd.f32 %v818_v60, %v786_v2  ;;  %v788_v11 = vmul.f32 %v772_v44, %v385_v55 }
 0x23c   : >> { %v790_v14 = vmul.f32 %v774_v12, %v387_v5  ;;  %v822_v15 = vmul.f32 9e+15, %v1888_v7 }
 0x23d   : >> { %v3200_v13 = vadd.f32 %v820_v6, %v788_v11 }
 0x23e   : >> { %v3203_v16 = vadd.f32 %v822_v15, %v790_v14 }
 0x23f   : >> { %863 = vmax.xlane.f32.xlu1 %v3187_v63  ;;  %857 = vmax.xlane.f32.xlu0 %v3189_v1 }
 0x243   : >> { %867 = vmax.xlane.f32.xlu1 %v3194_v8  ;;  %861 = vmax.xlane.f32.xlu0 %v3196_v9 }
 0x247   : >> { %865 = vmax.xlane.f32.xlu0 %v3200_v13 }
 0x24b   : >> { %869 = vmax.xlane.f32.xlu0 %v3203_v16 }
 0x2b4   : >> { %v842_v17 = vpop.xlane.xlu1 %841  ;;  %v840_v18 = vpop.xlane.xlu0 %839 }
 0x2b5   : >> { %v872_v22 = vsub.f32 %v3131_v47, %v842_v17  ;;  %v871_v23 = vsub.f32 %v3133_v48, %v840_v18 }
 0x2b7   : >> { %v889_v24 = vmul.f32 1.442695, %v872_v22  ;;  %v887_v25 = vmul.f32 1.442695, %v871_v23  ;;  %v2812_v23 = vmov 127  }
 0x2b8   : >> { %v848_v51 = vpop.xlane.xlu1 %847  ;;  %v844_v32 = vpop.xlane.xlu0 %843  ;;  %2408 = vset.pattern.permute.xlu0 %v2812_v23  ;;  %2409 = vset.pattern.permute.xlu1 %v2812_v23 }
 0x2b9   : >> { %2418 = vpow2.f32 %v889_v24  ;;  %v873_v33 = vsub.f32 %v3152_v59, %v844_v32  ;;  %v875_v35 = vsub.f32 %v3147_v29, %v848_v51 }
 0x2ba   : >> { %2420 = vpow2.f32 %v887_v25 }
 0x2bb   : >> { %v891_v36 = vmul.f32 1.442695, %v873_v33  ;;  %v895_v46 = vmul.f32 1.442695, %v875_v35 }
 0x2bc   : >> { %v852_v38 = vpop.xlane.xlu1 %851  ;;  %v846_v41 = vpop.xlane.xlu0 %845 }
 0x2bd   : >> { %v874_v45 = vsub.f32 %v3162_v10, %v846_v41  ;;  %2422 = vpow2.f32 %v891_v36  ;;  %v877_v47 = vsub.f32 %v3159_v58, %v852_v38 }
 0x2bf   : >> { %v893_v48 = vmul.f32 1.442695, %v874_v45  ;;  %v899_v59 = vmul.f32 1.442695, %v877_v47 }
 0x2c0   : >> { %v856_v19 = vpop.xlane.xlu1 %855  ;;  %v850_v20 = vpop.xlane.xlu0 %849 }
 0x2c1   : >> { %v876_v49 = vsub.f32 %v3172_v31, %v850_v20  ;;  %2424 = vpow2.f32 %v893_v48  ;;  %v879_v30 = vsub.f32 %v3170_v26, %v856_v19 }
 0x2c2   : >> { %2426 = vpow2.f32 %v895_v46 }
 0x2c3   : >> { %v897_v29 = vmul.f32 1.442695, %v876_v49  ;;  %v903_v58 = vmul.f32 1.442695, %v879_v30 }
 0x2c4   : >> { %v860_v21 = vpop.xlane.xlu1 %859  ;;  %v854_v37 = vpop.xlane.xlu0 %853 }
 0x2c5   : >> { %v878_v50 = vsub.f32 %v3182_v34, %v854_v37  ;;  %2428 = vpow2.f32 %v897_v29  ;;  %v881_v39 = vsub.f32 %v3180_v43, %v860_v21 }
 0x2c6   : >> { %v2419_v10 = vpop.eup %2418  ;;  %2430 = vpow2.f32 %v899_v59 }
 0x2c7   : >> { %v2421_v42 = vpop.eup %2420  ;;  %v901_v27 = vmul.f32 1.442695, %v878_v50  ;;  %v907_v52 = vmul.f32 1.442695, %v881_v39 }
 0x2c8   : >> { %2112 = vmatprep.mubr.f32.mxu0 %v2421_v42  ;;  %v864_v31 = vpop.xlane.xlu1 %863  ;;  %v858_v40 = vpop.xlane.xlu0 %857 }
 0x2c9   : >> { %2113 = vmatmul.mubr.f32.vlgmr.msra.gmra.mxu0 %v2419_v10  ;;  %v880_v53 = vsub.f32 %v3189_v1, %v858_v40  ;;  %2432 = vpow2.f32 %v901_v27  ;;  %v883_v34 = vsub.f32 %v3187_v63, %v864_v31 }
 0x2ca   : >> { %v2423_v26 = vpop.eup %2422  ;;  %2434 = vpow2.f32 %v903_v58 }
 0x2cb   : >> { %v905_v28 = vmul.f32 1.442695, %v880_v53  ;;  %2115 = vmatprep.mubr.f32.mxu0 %v2423_v26  ;;  %v911_v57 = vmul.f32 1.442695, %v883_v34 }
 0x2cc   : >> { %v868_v54 = vpop.xlane.xlu1 %867  ;;  %v862_v55 = vpop.xlane.xlu0 %861 }
 0x2cd   : >> { %v882_v56 = vsub.f32 %v3196_v9, %v862_v55  ;;  %2436 = vpow2.f32 %v905_v28  ;;  %v885_v60 = vsub.f32 %v3194_v8, %v868_v54 }
 0x2ce   : >> { %v2425_v43 = vpop.eup %2424  ;;  %2438 = vpow2.f32 %v907_v52 }
 0x2cf   : >> { %v909_v61 = vmul.f32 1.442695, %v882_v56  ;;  %v2427_v62 = vpop.eup %2426  ;;  %2116 = vmatmul.mubr.f32.gmra.mxu0 %v2425_v43  ;;  %v915_v44 = vmul.f32 1.442695, %v885_v60 }
 0x2d0   : >> { %v866_v1 = vpop.xlane.xlu0 %865  ;;  %2118 = vmatprep.mubr.f32.mxu0 %v2427_v62 }
 0x2d1   : >> { %v884_v2 = vsub.f32 %v3200_v13, %v866_v1  ;;  %2440 = vpow2.f32 %v909_v61 }
 0x2d2   : >> { %v2429_v63 = vpop.eup %2428  ;;  %2442 = vpow2.f32 %v911_v57 }
 0x2d3   : >> { %v913_v5 = vmul.f32 1.442695, %v884_v2  ;;  %v2431_v6 = vpop.eup %2430  ;;  %2119 = vmatmul.mubr.f32.gmra.mxu0 %v2429_v63 }
 0x2d4   : >> { %v870_v7 = vpop.xlane.xlu0 %869  ;;  %2121 = vmatprep.mubr.f32.mxu0 %v2431_v6 }
 0x2d5   : >> { %2444 = vpow2.f32 %v913_v5  ;;  %v886_v9 = vsub.f32 %v3203_v16, %v870_v7 }
 0x2d6   : >> { %v2433_v8 = vpop.eup %2432  ;;  %2446 = vpow2.f32 %v915_v44 }
 0x2d7   : >> { %v917_v11 = vmul.f32 1.442695, %v886_v9  ;;  %v2435_v12 = vpop.eup %2434  ;;  %2122 = vmatmul.mubr.f32.gmra.mxu0 %v2433_v8 }
 0x2d8   : >> { %2124 = vmatprep.mubr.f32.mxu0 %v2435_v12 }
 0x2d9   : >> { %2448 = vpow2.f32 %v917_v11 }
 0x2da   : >> { %v2437_v13 = vpop.eup %2436 }
 0x2db   : >> { %v2439_v14 = vpop.eup %2438  ;;  %2125 = vmatmul.mubr.f32.gmra.mxu0 %v2437_v13 }
 0x2dc   : >> { %2127 = vmatprep.mubr.f32.mxu0 %v2439_v14 }
 0x2de   : >> { %v2441_v15 = vpop.eup %2440 }
 0x2df   : >> { %v2443_v17 = vpop.eup %2442  ;;  %2128 = vmatmul.mubr.f32.gmra.mxu0 %v2441_v15 }
 0x2e0   : >> { %2130 = vmatprep.mubr.f32.mxu0 %v2443_v17 }
 0x2e2   : >> { %v2445_v18 = vpop.eup %2444 }
 0x2e3   : >> { %v2447_v22 = vpop.eup %2446  ;;  %2131 = vmatmul.mubr.f32.gmra.mxu0 %v2445_v18 }
 0x2e4   : >> { %2133 = vmatprep.mubr.f32.mxu0 %v2447_v22 }
 0x2e6   : >> { %v2449_v16 = vpop.eup %2448 }
 0x2e7   : >> { %2134 = vmatmul.mubr.f32.gmra.mxu0 %v2449_v16 }
 0x389   : >> { %v3222_v24 = vpop.f32.mrf.mxu0 }
 0x38a   : >> { %2450 = vrcp.f32 %v3222_v24 }
 0x38b   : >> { %v3225_v25 = vpop.f32.mrf.mxu0 }
 0x38c   : >> { %2452 = vrcp.f32 %v3225_v25 }
 0x38f   : >> { %v3228_v51 = vpop.f32.mrf.mxu0 }
 0x390   : >> { %2454 = vrcp.f32 %v3228_v51 }
 0x391   : >> { %v3231_v32 = vpop.f32.mrf.mxu0 }
 0x392   : >> { %2456 = vrcp.f32 %v3231_v32 }
 0x393   : >> { %v3233_v33 = vpop.f32.mrf.mxu0 }
 0x394   : >> { %2458 = vrcp.f32 %v3233_v33 }
 0x395   : >> { %v3236_v35 = vpop.f32.mrf.mxu0 }
 0x396   : >> { %2460 = vrcp.f32 %v3236_v35 }
 0x397   : >> { %v2451_v36 = vpop.eup %2450  ;;  %v3238_v38 = vpop.f32.mrf.mxu0 }
 0x398   : >> { %1103 = vperm.xlu0 %2408, %v2451_v36   ;;  %2462 = vrcp.f32 %v3238_v38 }
 0x399   : >> { %v2453_v41 = vpop.eup %2452  ;;  %v3241_v45 = vpop.f32.mrf.mxu0 }
 0x39a   : >> { %1098 = vperm.xlu1 %2409, %v2453_v41  }
 0x39b   : >> { %v3243_v46 = vpop.f32.mrf.mxu0 }
 0x39d   : >> { %v2455_v47 = vpop.eup %2454  ;;  %v3246_v48 = vpop.f32.mrf.mxu0 }
 0x39e   : >> { %1113 = vperm.xlu1 %2409, %v2455_v47  }
 0x39f   : >> { %v3248_v19 = vpop.f32.mrf.mxu0  ;;  %v2457_v20 = vpop.eup %2456 }
 0x3a1   : >> { %v3251_v49 = vpop.f32.mrf.mxu0  ;;  %v2459_v30 = vpop.eup %2458 }
 0x3a2   : >> { %2464 = vrcp.f32 %v3251_v49  ;;  %1108 = vperm.xlu1 %2409, %v2457_v20  }
 0x3a3   : >> { %v3254_v59 = vpop.f32.mrf.mxu0  ;;  %2466 = vrcp.f32 %v3241_v45  ;;  %v2461_v37 = vpop.eup %2460 }
 0x3a5   : >> { %v3257_v29 = vpop.f32.mrf.mxu0  ;;  %v2463_v10 = vpop.eup %2462 }
 0x3a6   : >> { %2468 = vrcp.f32 %v3257_v29  ;;  %1123 = vperm.xlu1 %2409, %v2459_v30  }
 0x3a7   : >> { %v3260_v21 = vpop.f32.mrf.mxu0  ;;  %2470 = vrcp.f32 %v3243_v46 }
 0x3a9   : >> { %v3263_v50 = vpop.f32.mrf.mxu0 }
 0x3aa   : >> { %2472 = vrcp.f32 %v3263_v50  ;;  %1118 = vperm.xlu1 %2409, %v2461_v37  }
 0x3ab   : >> { %2474 = vrcp.f32 %v3246_v48 }
 0x3ac   : >> { %2476 = vrcp.f32 %v3248_v19 }
 0x3ad   : >> { %2478 = vrcp.f32 %v3254_v59 }
 0x3ae   : >> { %1133 = vperm.xlu1 %2409, %v2463_v10   ;;  %2480 = vrcp.f32 %v3260_v21 }
 0x3af   : >> { %v2465_v42 = vpop.eup %2464 }
 0x3b0   : >> { %1148 = vperm.xlu0 %2408, %v2465_v42   ;;  %v2467_v58 = vpop.eup %2466 }
 0x3b2   : >> { %1128 = vperm.xlu1 %2409, %v2467_v58  }
 0x3b3   : >> { %v2469_v39 = vpop.eup %2468 }
 0x3b4   : >> { %1158 = vperm.xlu0 %2408, %v2469_v39   ;;  %v2471_v27 = vpop.eup %2470 }
 0x3b6   : >> { %1143 = vperm.xlu1 %2409, %v2471_v27  }
 0x3b7   : >> { %v2473_v31 = vpop.eup %2472 }
 0x3b8   : >> { %1168 = vperm.xlu0 %2408, %v2473_v31   ;;  %v2475_v40 = vpop.eup %2474 }
 0x3b9   : >> { %v2477_v53 = vpop.eup %2476 }
 0x3ba   : >> { %1138 = vperm.xlu1 %2409, %v2475_v40   ;;  %v2479_v26 = vpop.eup %2478 }
 0x3bb   : >> { %v2481_v52 = vpop.eup %2480 }
 0x3be   : >> { %1153 = vperm.xlu1 %2409, %v2477_v53  }
 0x3c2   : >> { %1163 = vperm.xlu1 %2409, %v2479_v26  }
 0x3c6   : >> { %1173 = vperm.xlu1 %2409, %v2481_v52  }
 0x413   : >> { %v1104_v34 = vpop.permute.xlu0 %1103 }
 0x414   : >> { %v1177_v28 = vmul.f32 %v3222_v24, %v1104_v34 }
 0x415   : >> { %v1099_v54 = vpop.permute.xlu1 %1098 }
 0x416   : >> { %v1209_v55 = vmin.f32 %v1177_v28, 0.0  ;;  %v1176_v56 = vmul.f32 %v1099_v54, %v3225_v25  ;;  %vm1193_vm3 = vcmp.gt.f32.partialorder %v1177_v28, 0.0 }
 0x418   : >> { %v1226_v43 = vmul.f32 1.442695, %v1209_v55  ;;  %v1208_v57 = vmin.f32 %v1176_v56, 0.0  ;;  %vm1192_vm4 = vcmp.gt.f32.partialorder %v1176_v56, 0.0 }
 0x419   : >> { %v1114_v61 = vpop.permute.xlu1 %1113 }
 0x41a   : >> { %2482 = vpow2.f32 %v1226_v43  ;;  %v1224_v60 = vmul.f32 1.442695, %v1208_v57  ;;  %v1179_v62 = vmul.f32 %v3228_v51, %v1114_v61 }
 0x41c   : >> { %2484 = vpow2.f32 %v1224_v60  ;;  %v1211_v1 = vmin.f32 %v1179_v62, 0.0  ;;  %vm1195_vm5 = vcmp.gt.f32.partialorder %v1179_v62, 0.0 }
 0x41d   : >> { %v1109_v2 = vpop.permute.xlu1 %1108 }
 0x41e   : >> { %v1230_v63 = vmul.f32 1.442695, %v1211_v1  ;;  %v1178_v44 = vmul.f32 %v1109_v2, %v3231_v32 }
 0x420   : >> { %2486 = vpow2.f32 %v1230_v63  ;;  %v1210_v5 = vmin.f32 %v1178_v44, 0.0  ;;  %vm1194_vm6 = vcmp.gt.f32.partialorder %v1178_v44, 0.0 }
 0x421   : >> { %v1124_v6 = vpop.permute.xlu1 %1123 }
 0x422   : >> { %v1228_v7 = vmul.f32 1.442695, %v1210_v5  ;;  %v1181_v9 = vmul.f32 %v3233_v33, %v1124_v6 }
 0x424   : >> { %2488 = vpow2.f32 %v1228_v7  ;;  %v1213_v8 = vmin.f32 %v1181_v9, 0.0  ;;  %vm1197_vm7 = vcmp.gt.f32.partialorder %v1181_v9, 0.0 }
 0x425   : >> { %v1119_v11 = vpop.permute.xlu1 %1118 }
 0x426   : >> { %v1234_v13 = vmul.f32 1.442695, %v1213_v8  ;;  %v3276_v14 = vmul.f32 %v1119_v11, %v3236_v35 }
 0x427   : >> { %v2483_v12 = vpop.eup %2482 }
 0x428   : >> { %v1890_v15 = vadd.f32 -1.0, %v2483_v12  ;;  %2490 = vpow2.f32 %v1234_v13  ;;  %v1212_v18 = vmin.f32 %v3276_v14, 0.0  ;;  %vm1196_vm8 = vcmp.gt.f32.partialorder %v3276_v14, 0.0 }
 0x429   : >> { %v2485_v17 = vpop.eup %2484  ;;  %v1134_v23 = vpop.permute.xlu1 %1133 }
 0x42a   : >> { %v3279_v6 = vsel %vm1193_vm3, %v1177_v28, %v1890_v15   ;;  %v1889_v16 = vadd.f32 -1.0, %v2485_v17  ;;  %v1232_v24 = vmul.f32 1.442695, %v1212_v18  ;;  %v3282_v25 = vmul.f32 %v3238_v38, %v1134_v23 }
 0x42b   : >> { %v3669_v22 = vmov %v3279_v6  ;;  %v1149_v32 = vpop.permute.xlu0 %1148 }
 0x42c   : >> { %v3284_v5 = vsel %vm1192_vm4, %v1176_v56, %v1889_v16   ;;  %2492 = vpow2.f32 %v1232_v24  ;;  %v1215_v33 = vmin.f32 %v3282_v25, 0.0  ;;  %v3288_v35 = vmul.f32 %v1149_v32, %v3251_v49 }
 0x42d   : >> { %v3670_v51 = vmov %v3284_v5  ;;  %v2487_v36 = vpop.eup %2486  ;;  %v1129_v41 = vpop.permute.xlu1 %1128  ;;  %vm1199_vm9 = vcmp.gt.f32.partialorder %v3282_v25, 0.0 }
 0x42e   : >> { %v1892_v47 = vadd.f32 -1.0, %v2487_v36  ;;  %v1238_v20 = vmul.f32 1.442695, %v1215_v33  ;;  %v1218_v30 = vmin.f32 %v3288_v35, 0.0  ;;  %v3292_v37 = vmul.f32 %v1129_v41, %v3241_v45 }
 0x42f   : >> { %v1159_v38 = vpop.permute.xlu0 %1158  ;;  %vm1202_vm10 = vcmp.gt.f32.partialorder %v3288_v35, 0.0 }
 0x430   : >> { %v3294_v8 = vsel %vm1195_vm5, %v1179_v62, %v1892_v47   ;;  %2494 = vpow2.f32 %v1238_v20  ;;  %v1244_v10 = vmul.f32 1.442695, %v1218_v30  ;;  %v3297_v58 = vmul.f32 %v1159_v38, %v3257_v29 }
 0x431   : >> { %v3671_v42 = vmov %v3294_v8  ;;  %v2489_v49 = vpop.eup %2488  ;;  %v1214_v39 = vmin.f32 %v3292_v37, 0.0  ;;  %v1144_v27 = vpop.permute.xlu1 %1143  ;;  %vm1198_vm11 = vcmp.gt.f32.partialorder %v3292_v37, 0.0 }
 0x432   : >> { %v1891_v31 = vadd.f32 -1.0, %v2489_v49  ;;  %2496 = vpow2.f32 %v1244_v10  ;;  %v1220_v40 = vmin.f32 %v3297_v58, 0.0  ;;  %v3302_v45 = vmul.f32 %v3243_v46, %v1144_v27 }
 0x433   : >> { %v1236_v53 = vmul.f32 1.442695, %v1214_v39  ;;  %v1169_v26 = vpop.permute.xlu0 %1168  ;;  %vm1204_vm12 = vcmp.gt.f32.partialorder %v3297_v58, 0.0 }
 0x434   : >> { %v3304_v7 = vsel %vm1194_vm6, %v1178_v44, %v1891_v31   ;;  %v1248_v34 = vmul.f32 1.442695, %v1220_v40  ;;  %v1190_v29 = vmul.f32 %v1169_v26, %v3263_v50  ;;  %v1217_v54 = vmin.f32 %v3302_v45, 0.0 }
 0x435   : >> { %v3672_v52 = vmov %v3304_v7  ;;  %v2491_v28 = vpop.eup %2490  ;;  %2498 = vpow2.f32 %v1236_v53  ;;  %v1139_v55 = vpop.permute.xlu1 %1138  ;;  %vm1201_vm13 = vcmp.gt.f32.partialorder %v3302_v45, 0.0 }
 0x436   : >> { %v1894_v56 = vadd.f32 -1.0, %v2491_v28  ;;  %2500 = vpow2.f32 %v1248_v34  ;;  %v1222_v43 = vmin.f32 %v1190_v29, 0.0  ;;  %v1242_v57 = vmul.f32 1.442695, %v1217_v54 }
 0x437   : >> { %v1184_v60 = vmul.f32 %v1139_v55, %v3246_v48  ;;  %vm1206_vm14 = vcmp.gt.f32.partialorder %v1190_v29, 0.0 }
 0x438   : >> { %v3309_v10 = vsel %vm1197_vm7, %v1181_v9, %v1894_v56   ;;  %v1252_v61 = vmul.f32 1.442695, %v1222_v43  ;;  %2502 = vpow2.f32 %v1242_v57 }
 0x439   : >> { %v3673_v46 = vmov %v3309_v10  ;;  %v2493_v62 = vpop.eup %2492  ;;  %v1216_v1 = vmin.f32 %v1184_v60, 0.0  ;;  %v1154_v2 = vpop.permute.xlu1 %1153  ;;  %vm1200_vm15 = vcmp.gt.f32.partialorder %v1184_v60, 0.0 }
 0x43a   : >> { %v1893_v50 = vadd.f32 -1.0, %v2493_v62  ;;  %2504 = vpow2.f32 %v1252_v61  ;;  %v1187_v63 = vmul.f32 %v3248_v19, %v1154_v2 }
 0x43b   : >> { %v1240_v44 = vmul.f32 1.442695, %v1216_v1 }
 0x43c   : >> { %v3314_v9 = vsel %vm1196_vm8, %v3276_v14, %v1893_v50   ;;  %v1219_v5 = vmin.f32 %v1187_v63, 0.0  ;;  %vm1203_vm0 = vcmp.gt.f32.partialorder %v1187_v63, 0.0 }
 0x43d   : >> { %v3674_v23 = vmov %v3314_v9  ;;  %v2495_v6 = vpop.eup %2494  ;;  %2506 = vpow2.f32 %v1240_v44  ;;  %v1164_v48 = vpop.permute.xlu1 %1163 }
 0x43e   : >> { %v1896_v7 = vadd.f32 -1.0, %v2495_v6  ;;  %v1246_v8 = vmul.f32 1.442695, %v1219_v5  ;;  %v1189_v11 = vmul.f32 %v3254_v59, %v1164_v48  ;;  %v3692_v6 = vmov %v3669_v22 }
 0x43f   : >> { %v2497_v12 = vpop.eup %2496  ;;  %v3693_v5 = vmov %v3670_v51 }
 0x440   : >> { %v3319_v13 = vsel %vm1199_vm9, %v3282_v25, %v1896_v7   ;;  %v1899_v19 = vadd.f32 -1.0, %v2497_v12  ;;  %2508 = vpow2.f32 %v1246_v8  ;;  %v1221_v14 = vmin.f32 %v1189_v11, 0.0 }
 0x441   : >> { %v3675_v24 = vmov %v3319_v13  ;;  %v1174_v9 = vpop.permute.xlu1 %1173  ;;  %vm1205_vm1 = vcmp.gt.f32.partialorder %v1189_v11, 0.0  ;;  %v3690_v8 = vmov %v3671_v42  ;;  %v3691_v7 = vmov %v3672_v52 }
 0x442   : >> { %v2499_v15 = vpop.eup %2498  ;;  %v3323_v17 = vsel %vm1202_vm10, %v3288_v35, %v1899_v19   ;;  %v1191_v18 = vmul.f32 %v3260_v21, %v1174_v9  ;;  %v1250_v33 = vmul.f32 1.442695, %v1221_v14  ;;  %v3686_v12 = vmov %v3675_v24 }
 0x443   : >> { %v3676_v32 = vmov %v3323_v17  ;;  %v2501_v16 = vpop.eup %2500  ;;  %v1895_v59 = vadd.f32 -1.0, %v2499_v15  ;;  %v3689_v9 = vmov %v3674_v23  ;;  %v3427_v6 = vmul.f32 (%p3335_p11), %v2907_v4, %v3675_v24 }
 0x444   : >> { %v1901_v36 = vadd.f32 -1.0, %v2501_v16  ;;  %v1223_v25 = vmin.f32 %v1191_v18, 0.0  ;;  %2510 = vpow2.f32 %v1250_v33  ;;  %vm1207_vm2 = vcmp.gt.f32.partialorder %v1191_v18, 0.0 }
 0x445   : >> { %v3328_v41 = vsel %vm1198_vm11, %v3292_v37, %v1895_v59   ;;  %v2503_v47 = vpop.eup %2502  ;;  %v3683_v15 = vmov %v3676_v32  ;;  %v3409_v62 = vmul.f32 (%p3335_p11), %v2907_v4, %v3676_v32  ;;  %v3435_v7 = vmul.f32 (%p3335_p11), %v2907_v4, %v3673_v46 }
 0x446   : >> { %v1284_v30 = vsel %vm1204_vm12, %v3297_v58, %v1901_v36   ;;  %v1254_v35 = vmul.f32 1.442695, %v1223_v25  ;;  %v1898_v38 = vadd.f32 -1.0, %v2503_v47  ;;  %v3431_v48 = vmul.f32 (%p3335_p11), %v2907_v4, %v3328_v41 }
 0x447   : >> { %v2505_v20 = vpop.eup %2504  ;;  %v3681_v17 = vmov %v1284_v30  ;;  %v3394_v43 = vmul.f32 (%p3335_p11), %v2907_v4, %v1284_v30  ;;  %v1314_v50 = vmul.f32 (%p3335_p11), %v3409_v62, %v3409_v62  ;;  %v1311_v8 = vmul.f32 (%p3335_p11), %v3427_v6, %v3427_v6 }
 0x448   : >> { %v1903_v21 = vadd.f32 -1.0, %v2505_v20  ;;  %2512 = vpow2.f32 %v1254_v35  ;;  %v1281_v49 = vsel %vm1201_vm13, %v3302_v45, %v1898_v38   ;;  %v3443_v12 = vmul.f32 (%p3335_p11), %v2907_v4, %v3674_v23 }
 0x449   : >> { %v3684_v14 = vmov %v1281_v49  ;;  %v1316_v3 = vmul.f32 (%p3335_p11), %v3394_v43, %v3394_v43  ;;  %v3412_v1 = vmul.f32 (%p3335_p11), %v2907_v4, %v1281_v49  ;;  %v3459_v23 = vmul.f32 (%p3335_p11), %v2907_v4, %v3669_v22 }
 0x44a   : >> { %v2507_v10 = vpop.eup %2506  ;;  %v1286_v39 = vsel %vm1206_vm14, %v1190_v29, %v1903_v21   ;;  %v1308_v24 = vmul.f32 (%p3335_p11), %v3443_v12, %v3443_v12  ;;  %v3467_v9 = vmul.f32 (%p3335_p11), %v2907_v4, %v3670_v51 }
 0x44b   : >> { %v1897_v37 = vadd.f32 -1.0, %v2507_v10  ;;  %v3679_v19 = vmov %v1286_v39  ;;  %v3688_v10 = vmov %v3673_v46  ;;  %v3388_v29 = vmul.f32 (%p3335_p11), %v2907_v4, %v1286_v39 }
 0x44c   : > { %v1313_v44 = vmul.f32 (%p3335_p11), %v3412_v1, %v3412_v1  ;;  %v1309_v46 = vmul.f32 (%p3335_p11), %v3435_v7, %v3435_v7  ;;  %v3455_v19 = vmul.f32 (%p3335_p11), %v2907_v4, %v3672_v52  ;;  %v1305_v52 = vmul.f32 (%p3335_p11), %v3459_v23, %v3459_v23 }
 0x44d   : >> { %v2509_v27 = vpop.eup %2508  ;;  %v1280_v31 = vsel %vm1200_vm15, %v1184_v60, %v1897_v37   ;;  %v1318_v0 = vmul.f32 (%p3335_p11), %v3388_v29, %v3388_v29  ;;  %v1304_v22 = vmul.f32 (%p3335_p11), %v3467_v9, %v3467_v9 }
 0x44e   : >> { %v1900_v40 = vadd.f32 -1.0, %v2509_v27  ;;  %v3685_v13 = vmov %v1280_v31  ;;  %v1306_v14 = vmul.f32 (%p3335_p11), %v3455_v19, %v3455_v19 }
 0x44f   : > { %v3447_v13 = vmul.f32 (%p3335_p11), %v2907_v4, %v3671_v42 }
 0x450   : >> { %v1283_v53 = vsel %vm1203_vm0, %v1187_v63, %v1900_v40   ;;  %v3419_v63 = vmul.f32 (%p3335_p11), %v2907_v4, %v1280_v31 }
 0x451   : >> { %v2511_v58 = vpop.eup %2510  ;;  %v3682_v16 = vmov %v1283_v53  ;;  %v3401_v61 = vmul.f32 (%p3335_p11), %v2907_v4, %v1283_v53  ;;  %v1307_v42 = vmul.f32 (%p3335_p11), %v3447_v13, %v3447_v13 }
 0x452   : >> { %v1902_v26 = vadd.f32 -1.0, %v2511_v58  ;;  %v1312_v5 = vmul.f32 (%p3335_p11), %v3419_v63, %v3419_v63 }
 0x453   : > { %v1315_v2 = vmul.f32 (%p3335_p11), %v3401_v61, %v3401_v61 }
 0x454   : >> { %v1285_v28 = vsel %vm1205_vm1, %v1189_v11, %v1902_v26   ;;  %v3687_v11 = vmov %v3328_v41 }
 0x455   : >> { %v2513_v34 = vpop.eup %2512  ;;  %332 = sbr.rel (!%p3335_p11) target bundleno = 29 (0x1d), region = 102  ;;  %v3391_v56 = vmul.f32 (%p3335_p11), %v2907_v4, %v1285_v28  ;;  %v1310_v11 = vmul.f32 (%p3335_p11), %v3431_v48, %v3431_v48 }
 0x456   : >> { %v1904_v54 = vadd.f32 -1.0, %v2513_v34 }
 0x457   : > { %v1317_v60 = vmul.f32 (%p3335_p11), %v3391_v56, %v3391_v56 }
 0x458   : >> { %v1287_v55 = vsel %vm1207_vm2, %v1191_v18, %v1904_v54   ;;  %v3680_v18 = vmov %v1285_v28 }
 0x459   : >> { %v3678_v20 = vmov %v1287_v55  ;;  %v3385_v45 = vmul.f32 (%p3335_p11), %v2907_v4, %v1287_v55  ;;  %1346 = vadd.xlane.f32.xlu1 (%p3335_p11), %v1317_v60 }
 0x45b   : > { %v1319_v57 = vmul.f32 %v3385_v45, %v3385_v45 }
 0x45d   : > { %1350 = vadd.xlane.f32.xlu0 %v1319_v57  ;;  %1344 = vadd.xlane.f32.xlu1 %v1316_v3 }
 0x461   : > { %1348 = vadd.xlane.f32.xlu0 %v1318_v0  ;;  %1340 = vadd.xlane.f32.xlu1 %v1314_v50 }
 0x465   : > { %1342 = vadd.xlane.f32.xlu0 %v1315_v2  ;;  %1336 = vadd.xlane.f32.xlu1 %v1312_v5 }
 0x469   : > { %1338 = vadd.xlane.f32.xlu0 %v1313_v44  ;;  %1332 = vadd.xlane.f32.xlu1 %v1310_v11 }
 0x46d   : > { %1334 = vadd.xlane.f32.xlu0 %v1311_v8  ;;  %1328 = vadd.xlane.f32.xlu1 %v1308_v24 }
 0x471   : > { %1330 = vadd.xlane.f32.xlu0 %v1309_v46  ;;  %1324 = vadd.xlane.f32.xlu1 %v1306_v14 }
 0x475   : > { %1326 = vadd.xlane.f32.xlu0 %v1307_v42  ;;  %1320 = vadd.xlane.f32.xlu1 %v1304_v22 }
 0x479   : > { %1322 = vadd.xlane.f32.xlu0 %v1305_v52 }
 0x4e2   : > { %v1347_v17 = vpop.xlane.xlu1 %1346 }
 0x4e3   : > { %v1365_v18 = vmax.f32 %v1347_v17, 1e-24 }
 0x4e6   : > { %v1351_v15 = vpop.xlane.xlu0 %1350  ;;  %v1345_v59 = vpop.xlane.xlu1 %1344 }
 0x4e7   : > { %v1367_v32 = vmax.f32 %v1351_v15, 1e-24  ;;  %v1364_v51 = vmax.f32 %v1345_v59, 1e-24 }
 0x4e9   : > { %2514 = vrsqrt.f32 %v1367_v32 }
 0x4ea   : > { %v1349_v16 = vpop.xlane.xlu0 %1348  ;;  %2516 = vrsqrt.f32 %v1365_v18  ;;  %v1341_v36 = vpop.xlane.xlu1 %1340 }
 0x4eb   : > { %v1366_v4 = vmax.f32 %v1349_v16, 1e-24  ;;  %v1362_v41 = vmax.f32 %v1341_v36, 1e-24 }
 0x4ed   : > { %2518 = vrsqrt.f32 %v1366_v4 }
 0x4ee   : > { %2520 = vrsqrt.f32 %v1364_v51  ;;  %v1343_v33 = vpop.xlane.xlu0 %1342  ;;  %v1337_v30 = vpop.xlane.xlu1 %1336 }
 0x4ef   : > { %v1363_v25 = vmax.f32 %v1343_v33, 1e-24  ;;  %v1360_v20 = vmax.f32 %v1337_v30, 1e-24 }
 0x4f1   : > { %2522 = vrsqrt.f32 %v1363_v25 }
 0x4f2   : > { %2524 = vrsqrt.f32 %v1362_v41  ;;  %v1339_v47 = vpop.xlane.xlu0 %1338  ;;  %v1333_v49 = vpop.xlane.xlu1 %1332 }
 0x4f3   : > { %v1361_v35 = vmax.f32 %v1339_v47, 1e-24  ;;  %v1358_v27 = vmax.f32 %v1333_v49, 1e-24 }
 0x4f5   : > { %2526 = vrsqrt.f32 %v1361_v35 }
 0x4f6   : > { %v2515_v38 = vpop.eup %2514  ;;  %2528 = vrsqrt.f32 %v1360_v20  ;;  %v1335_v21 = vpop.xlane.xlu0 %1334 }
 0x4f7   : > { %v2517_v10 = vpop.eup %2516  ;;  %v3474_v39 = vmul.f32 %v2515_v38, %v3385_v45  ;;  %v1359_v37 = vmax.f32 %v1335_v21, 1e-24  ;;  %v1329_v58 = vpop.xlane.xlu1 %1328 }
 0x4f8   : > { %v3477_v31 = vmul.f32 %v2517_v10, %v3391_v56  ;;  %v1356_v54 = vmax.f32 %v1329_v58, 1e-24 }
 0x4f9   : > { %1415 = vst [vmem:[%s2925_s11 + $0x78] sm:$0xff] %v3474_v39  ;;  %2136 = vmatprep.subr.mxu0 %v3474_v39  ;;  %2192 = vmatprep.subr.mxu1 %v3474_v39  ;;  %2530 = vrsqrt.f32 %v1359_v37 }
 0x4fa   : > { %v2519_v40 = vpop.eup %2518  ;;  %1413 = vst [vmem:[%s2925_s11 + $0x68] sm:$0xff] %v3477_v31  ;;  %2137 = vmatpush3.xpose.msra.mxu0 %v3474_v39  ;;  %2208 = vmatpush3.xpose.msra.mxu1 %v3474_v39  ;;  %2532 = vrsqrt.f32 %v1358_v27  ;;  %v1331_v53 = vpop.xlane.xlu0 %1330 }
 0x4fb   : > { %v2521_v26 = vpop.eup %2520  ;;  %v3488_v34 = vmul.f32 %v2519_v40, %v3388_v29  ;;  %v1357_v28 = vmax.f32 %v1331_v53, 1e-24  ;;  %v1325_v56 = vpop.xlane.xlu1 %1324 }
 0x4fc   : > { %v3491_v55 = vmul.f32 %v2521_v26, %v3394_v43  ;;  %v1354_v0 = vmax.f32 %v1325_v56, 1e-24 }
 0x4fd   : > { %1414 = vst [vmem:[%s2925_s11 + $0x70] sm:$0xff] %v3488_v34  ;;  %2138 = vmatprep.subr.mxu0 %v3488_v34  ;;  %2193 = vmatprep.subr.mxu1 %v3488_v34  ;;  %2534 = vrsqrt.f32 %v1357_v28 }
 0x4fe   : > { %v2523_v45 = vpop.eup %2522  ;;  %1412 = vst [vmem:[%s2925_s11 + $0x60] sm:$0xff] %v3491_v55  ;;  %2139 = vmatpush3.xpose.msra.mxu0 %v3488_v34  ;;  %2209 = vmatpush3.xpose.msra.mxu1 %v3488_v34  ;;  %2536 = vrsqrt.f32 %v1356_v54  ;;  %v1327_v29 = vpop.xlane.xlu0 %1326 }
 0x4ff   : > { %v2525_v43 = vpop.eup %2524  ;;  %v3502_v57 = vmul.f32 %v2523_v45, %v3401_v61  ;;  %2140 = vmatprep.subr.mxu0 %v3477_v31  ;;  %2194 = vmatprep.subr.mxu1 %v3477_v31  ;;  %v1355_v60 = vmax.f32 %v1327_v29, 1e-24  ;;  %v1321_v50 = vpop.xlane.xlu1 %1320 }
 0x500   : > { %v3507_v3 = vmul.f32 %v2525_v43, %v3409_v62  ;;  %v1352_v8 = vmax.f32 %v1321_v50, 1e-24 }
 0x501   : > { %1411 = vst [vmem:[%s2925_s11 + $0x58] sm:$0xff] %v3502_v57  ;;  %2538 = vrsqrt.f32 %v1355_v60 }
 0x502   : > { %v2527_v2 = vpop.eup %2526  ;;  %1410 = vst [vmem:[%s2925_s11 + $0x50] sm:$0xff] %v3507_v3  ;;  %2141 = vmatpush3.xpose.msra.mxu0 %v3477_v31  ;;  %2210 = vmatpush3.xpose.msra.mxu1 %v3477_v31  ;;  %2540 = vrsqrt.f32 %v1354_v0  ;;  %v1323_v61 = vpop.xlane.xlu0 %1322 }
 0x503   : > { %v2529_v44 = vpop.eup %2528  ;;  %v3516_v5 = vmul.f32 %v2527_v2, %v3412_v1  ;;  %2142 = vmatprep.subr.mxu0 %v3491_v55  ;;  %2195 = vmatprep.subr.mxu1 %v3491_v55  ;;  %v1353_v62 = vmax.f32 %v1323_v61, 1e-24 }
 0x504   : > { %v1392_v11 = vmul.f32 %v2529_v44, %v3419_v63 }
 0x505   : > { %1409 = vst [vmem:[%s2925_s11 + $0x48] sm:$0xff] %v3516_v5  ;;  %2542 = vrsqrt.f32 %v1353_v62 }
 0x506   : > { %v2531_v46 = vpop.eup %2530  ;;  %1408 = vst [vmem:[%s2925_s11 + $0x40] sm:$0xff] %v1392_v11  ;;  %2143 = vmatpush3.xpose.msra.mxu0 %v3491_v55  ;;  %2211 = vmatpush3.xpose.msra.mxu1 %v3491_v55  ;;  %2544 = vrsqrt.f32 %v1352_v8 }
 0x507   : > { %v2533_v1 = vpop.eup %2532  ;;  %v3527_v24 = vmul.f32 %v2531_v46, %v3427_v6  ;;  %2144 = vmatprep.subr.mxu0 %v3502_v57  ;;  %2196 = vmatprep.subr.mxu1 %v3502_v57 }
 0x508   : > { %v3532_v63 = vmul.f32 %v2533_v1, %v3431_v48  ;;  %2180 = vmatprep.mubr.f32.mxu1 %v1392_v11 }
 0x509   : > { %1407 = vst [vmem:[%s2925_s11 + $0x38] sm:$0xff] %v3527_v24 }
 0x50a   : > { %v2535_v42 = vpop.eup %2534  ;;  %2145 = vmatpush3.xpose.msra.mxu0 %v3502_v57  ;;  %2212 = vmatpush3.xpose.msra.mxu1 %v3502_v57  ;;  %1406 = vst [vmem:[%s2925_s11 + $0x30] sm:$0xff] %v3532_v63 }
 0x50b   : > { %v2537_v6 = vpop.eup %2536  ;;  %2146 = vmatprep.subr.mxu0 %v3507_v3  ;;  %2197 = vmatprep.subr.mxu1 %v3507_v3  ;;  %v3543_v48 = vmul.f32 %v2535_v42, %v3435_v7 }
 0x50c   : > { %v3546_v14 = vmul.f32 %v2537_v6, %v3443_v12 }
 0x50d   : > { %1405 = vst [vmem:[%s2925_s11 + $0x28] sm:$0xff] %v3543_v48 }
 0x50e   : > { %v2539_v52 = vpop.eup %2538  ;;  %2147 = vmatpush3.xpose.msra.mxu0 %v3507_v3  ;;  %2213 = vmatpush3.xpose.msra.mxu1 %v3507_v3  ;;  %1404 = vst [vmem:[%s2925_s11 + $0x20] sm:$0xff] %v3546_v14 }
 0x50f   : > { %v2541_v22 = vpop.eup %2540  ;;  %2148 = vmatprep.subr.mxu0 %v3516_v5  ;;  %2198 = vmatprep.subr.mxu1 %v3516_v5  ;;  %v1387_v7 = vmul.f32 %v2539_v52, %v3447_v13 }
 0x510   : > { %v1386_v12 = vmul.f32 %v2541_v22, %v3455_v19 }
 0x511   : > { %1403 = vst [vmem:[%s2925_s11 + $0x18] sm:$0xff] %v1387_v7 }
 0x512   : > { %v2543_v15 = vpop.eup %2542  ;;  %2149 = vmatpush3.xpose.msra.mxu0 %v3516_v5  ;;  %2214 = vmatpush3.xpose.msra.mxu1 %v3516_v5  ;;  %1402 = vst [vmem:[%s2925_s11 + $0x10] sm:$0xff] %v1386_v12 }
 0x513   : > { %v2545_v17 = vpop.eup %2544  ;;  %2150 = vmatprep.subr.mxu0 %v1392_v11  ;;  %2199 = vmatprep.subr.mxu1 %v1392_v11  ;;  %v1385_v32 = vmul.f32 %v2543_v15, %v3459_v23 }
 0x514   : > { %v1384_v18 = vmul.f32 %v2545_v17, %v3467_v9 }
 0x515   : > { %1401 = vst [vmem:[%s2925_s11 + $0x8] sm:$0xff] %v1385_v32 }
 0x516   : > { %2151 = vmatpush3.xpose.msra.mxu0 %v1392_v11  ;;  %2215 = vmatpush3.xpose.msra.mxu1 %v1392_v11  ;;  %1400 = vst [vmem:[%s2925_s11] sm:$0xff] %v1384_v18 }
 0x517   : > { %2152 = vmatprep.subr.mxu0 %v3527_v24  ;;  %2200 = vmatprep.subr.mxu1 %v3527_v24 }
 0x518   : > { %2168 = vmatprep.mubr.f32.mxu0 %v1384_v18 }
 0x51a   : > { %2153 = vmatpush3.xpose.msra.mxu0 %v3527_v24  ;;  %2216 = vmatpush3.xpose.msra.mxu1 %v3527_v24 }
 0x51b   : > { %2154 = vmatprep.subr.mxu0 %v3532_v63  ;;  %2201 = vmatprep.subr.mxu1 %v3532_v63 }
 0x51e   : > { %2155 = vmatpush3.xpose.msra.mxu0 %v3532_v63  ;;  %2217 = vmatpush3.xpose.msra.mxu1 %v3532_v63 }
 0x51f   : > { %2156 = vmatprep.subr.mxu0 %v3543_v48  ;;  %2202 = vmatprep.subr.mxu1 %v3543_v48 }
 0x522   : > { %2157 = vmatpush3.xpose.msra.mxu0 %v3543_v48  ;;  %2218 = vmatpush3.xpose.msra.mxu1 %v3543_v48 }
 0x523   : > { %2158 = vmatprep.subr.mxu0 %v3546_v14  ;;  %2203 = vmatprep.subr.mxu1 %v3546_v14 }
 0x526   : > { %2159 = vmatpush3.xpose.msra.mxu0 %v3546_v14  ;;  %2219 = vmatpush3.xpose.msra.mxu1 %v3546_v14 }
 0x527   : > { %2160 = vmatprep.subr.mxu0 %v1387_v7  ;;  %2204 = vmatprep.subr.mxu1 %v1387_v7 }
 0x52a   : > { %2161 = vmatpush3.xpose.msra.mxu0 %v1387_v7  ;;  %2220 = vmatpush3.xpose.msra.mxu1 %v1387_v7 }
 0x52b   : > { %2162 = vmatprep.subr.mxu0 %v1386_v12  ;;  %2205 = vmatprep.subr.mxu1 %v1386_v12 }
 0x52e   : > { %2163 = vmatpush3.xpose.msra.mxu0 %v1386_v12  ;;  %2221 = vmatpush3.xpose.msra.mxu1 %v1386_v12 }
 0x52f   : > { %2164 = vmatprep.subr.mxu0 %v1385_v32  ;;  %2206 = vmatprep.subr.mxu1 %v1385_v32 }
 0x532   : > { %2165 = vmatpush3.xpose.msra.mxu0 %v1385_v32  ;;  %2222 = vmatpush3.xpose.msra.mxu1 %v1385_v32 }
 0x533   : > { %2166 = vmatprep.subr.mxu0 %v1384_v18  ;;  %2207 = vmatprep.subr.mxu1 %v1384_v18 }
 0x536   : > { %2167 = vmatpush3.xpose.msra.mxu0 %v1384_v18  ;;  %2223 = vmatpush3.xpose.msra.mxu1 %v1384_v18 }
 0x539   : > { %2169 = vmatmul.mubr.f32.vlgmr.msra.gmra.mxu0 %v1385_v32  ;;  %2181 = vmatmul.mubr.f32.vlgmr.msra.gmra.mxu1 %v3516_v5 }
 0x53a   : > { %2171 = vmatprep.mubr.f32.mxu0 %v1386_v12  ;;  %2183 = vmatprep.mubr.f32.mxu1 %v3507_v3 }
 0x53d   : > { %2172 = vmatmul.mubr.f32.gmra.mxu0 %v1387_v7  ;;  %2184 = vmatmul.mubr.f32.gmra.mxu1 %v3502_v57 }
 0x53e   : > { %2174 = vmatprep.mubr.f32.mxu0 %v3546_v14  ;;  %2186 = vmatprep.mubr.f32.mxu1 %v3491_v55 }
 0x541   : > { %2175 = vmatmul.mubr.f32.gmra.mxu0 %v3543_v48  ;;  %2187 = vmatmul.mubr.f32.gmra.mxu1 %v3477_v31 }
 0x542   : > { %2177 = vmatprep.mubr.f32.mxu0 %v3532_v63  ;;  %2189 = vmatprep.mubr.f32.mxu1 %v3488_v34 }
 0x545   : > { %2178 = vmatmul.mubr.f32.gmra.mxu0 %v3527_v24  ;;  %2190 = vmatmul.mubr.f32.gmra.mxu1 %v3474_v39 }
 0x5f9   : > { %v2170_v13 = vpop.f32.mrf.mxu0  ;;  %v2182_v19 = vpop.f32.mrf.mxu1 }
 0x5fa   : > { %v1562_v23 = vsub.f32 0.0, %v2170_v13  ;;  %v1570_v9 = vsub.f32 0.0, %v2182_v19 }
 0x5fb   : > { %v1482_v16 = vpop.f32.mrf.mxu0  ;;  %v1522_v59 = vpop.f32.mrf.mxu1 }
 0x5fc   : > { %v1579_v4 = vmul.f32 1.442695, %v1562_v23  ;;  %v1595_v51 = vmul.f32 1.442695, %v1570_v9  ;;  %v1561_v33 = vsub.f32 0.0, %v1482_v16  ;;  %v1569_v36 = vsub.f32 0.0, %v1522_v59 }
 0x5fd   : > { %v2173_v25 = vpop.f32.mrf.mxu0  ;;  %v2185_v41 = vpop.f32.mrf.mxu1 }
 0x5fe   : > { %2546 = vpow2.f32 %v1579_v4  ;;  %v1577_v47 = vmul.f32 1.442695, %v1561_v33  ;;  %v1593_v30 = vmul.f32 1.442695, %v1569_v36  ;;  %v1564_v35 = vsub.f32 0.0, %v2173_v25 }
 0x5ff   : > { %2548 = vpow2.f32 %v1595_v51  ;;  %v1572_v20 = vsub.f32 0.0, %v2185_v41  ;;  %v1492_v38 = vpop.f32.mrf.mxu0  ;;  %v1532_v21 = vpop.f32.mrf.mxu1 }
 0x600   : > { %2550 = vpow2.f32 %v1577_v47  ;;  %v1583_v49 = vmul.f32 1.442695, %v1564_v35  ;;  %v1563_v10 = vsub.f32 0.0, %v1492_v38  ;;  %v1571_v39 = vsub.f32 0.0, %v1532_v21 }
 0x601   : > { %2552 = vpow2.f32 %v1593_v30  ;;  %v1599_v37 = vmul.f32 1.442695, %v1572_v20  ;;  %v2176_v27 = vpop.f32.mrf.mxu0  ;;  %v2188_v31 = vpop.f32.mrf.mxu1 }
 0x602   : > { %2554 = vpow2.f32 %v1583_v49  ;;  %v1581_v40 = vmul.f32 1.442695, %v1563_v10  ;;  %v1597_v53 = vmul.f32 1.442695, %v1571_v39  ;;  %v1566_v58 = vsub.f32 0.0, %v2176_v27 }
 0x603   : > { %2556 = vpow2.f32 %v1599_v37  ;;  %v1574_v26 = vsub.f32 0.0, %v2188_v31  ;;  %v1502_v34 = vpop.f32.mrf.mxu0  ;;  %v1542_v28 = vpop.f32.mrf.mxu1 }
 0x604   : > { %2558 = vpow2.f32 %v1581_v40  ;;  %v1587_v54 = vmul.f32 1.442695, %v1566_v58  ;;  %v1565_v55 = vsub.f32 0.0, %v1502_v34  ;;  %v1573_v45 = vsub.f32 0.0, %v1542_v28 }
 0x605   : > { %2560 = vpow2.f32 %v1597_v53  ;;  %v1603_v29 = vmul.f32 1.442695, %v1574_v26  ;;  %v2179_v56 = vpop.f32.mrf.mxu0  ;;  %v2191_v43 = vpop.f32.mrf.mxu1 }
 0x606   : > { %2562 = vpow2.f32 %v1587_v54  ;;  %v1585_v57 = vmul.f32 1.442695, %v1565_v55  ;;  %v1601_v60 = vmul.f32 1.442695, %v1573_v45  ;;  %v1568_v0 = vsub.f32 0.0, %v2179_v56 }
 0x607   : > { %2564 = vpow2.f32 %v1603_v29  ;;  %v1576_v3 = vsub.f32 0.0, %v2191_v43  ;;  %v1512_v2 = vpop.f32.mrf.mxu0  ;;  %v1552_v61 = vpop.f32.mrf.mxu1 }
 0x608   : > { %2566 = vpow2.f32 %v1585_v57  ;;  %v1591_v50 = vmul.f32 1.442695, %v1568_v0  ;;  %v1567_v44 = vsub.f32 0.0, %v1512_v2  ;;  %v1575_v5 = vsub.f32 0.0, %v1552_v61 }
 0x609   : > { %2568 = vpow2.f32 %v1601_v60  ;;  %v1607_v62 = vmul.f32 1.442695, %v1576_v3 }
 0x60a   : > { %2570 = vpow2.f32 %v1591_v50  ;;  %v1589_v8 = vmul.f32 1.442695, %v1567_v44  ;;  %v1605_v11 = vmul.f32 1.442695, %v1575_v5 }
 0x60b   : > { %v2547_v46 = vpop.eup %2546  ;;  %2572 = vpow2.f32 %v1607_v62 }
 0x60c   : > { %v2549_v1 = vpop.eup %2548  ;;  %v1610_v24 = vadd.f32 1.0, %v2547_v46  ;;  %2574 = vpow2.f32 %v1589_v8 }
 0x60d   : > { %v2551_v63 = vpop.eup %2550  ;;  %v1618_v42 = vadd.f32 1.0, %v2549_v1  ;;  %2576 = vpow2.f32 %v1605_v11 }
 0x60e   : > { %v2553_v6 = vpop.eup %2552  ;;  %2578 = vrcp.f32 %v1610_v24  ;;  %v1609_v48 = vadd.f32 1.0, %v2551_v63 }
 0x60f   : > { %v2555_v14 = vpop.eup %2554  ;;  %2580 = vrcp.f32 %v1618_v42  ;;  %v1617_v52 = vadd.f32 1.0, %v2553_v6 }
 0x610   : > { %v2557_v22 = vpop.eup %2556  ;;  %2582 = vrcp.f32 %v1609_v48  ;;  %v1612_v7 = vadd.f32 1.0, %v2555_v14 }
 0x611   : > { %v2559_v12 = vpop.eup %2558  ;;  %2584 = vrcp.f32 %v1617_v52  ;;  %v1620_v15 = vadd.f32 1.0, %v2557_v22 }
 0x612   : > { %v2561_v17 = vpop.eup %2560  ;;  %2586 = vrcp.f32 %v1612_v7  ;;  %v1611_v32 = vadd.f32 1.0, %v2559_v12 }
 0x613   : > { %v2563_v18 = vpop.eup %2562  ;;  %2588 = vrcp.f32 %v1620_v15  ;;  %v1619_v13 = vadd.f32 1.0, %v2561_v17 }
 0x614   : > { %v2565_v19 = vpop.eup %2564  ;;  %2590 = vrcp.f32 %v1611_v32  ;;  %v1614_v23 = vadd.f32 1.0, %v2563_v18 }
 0x615   : > { %v2567_v9 = vpop.eup %2566  ;;  %2592 = vrcp.f32 %v1619_v13  ;;  %v1622_v16 = vadd.f32 1.0, %v2565_v19 }
 0x616   : > { %v2569_v59 = vpop.eup %2568  ;;  %2594 = vrcp.f32 %v1614_v23  ;;  %v1613_v4 = vadd.f32 1.0, %v2567_v9 }
 0x617   : > { %v2571_v51 = vpop.eup %2570  ;;  %2596 = vrcp.f32 %v1622_v16  ;;  %v1621_v33 = vadd.f32 1.0, %v2569_v59 }
 0x618   : > { %v2573_v36 = vpop.eup %2572  ;;  %2598 = vrcp.f32 %v1613_v4  ;;  %v1616_v25 = vadd.f32 1.0, %v2571_v51 }
 0x619   : > { %v2575_v41 = vpop.eup %2574  ;;  %2600 = vrcp.f32 %v1621_v33  ;;  %v1624_v47 = vadd.f32 1.0, %v2573_v36 }
 0x61a   : > { %v2577_v30 = vpop.eup %2576  ;;  %2602 = vrcp.f32 %v1616_v25  ;;  %v1615_v35 = vadd.f32 1.0, %v2575_v41 }
 0x61b   : > { %v2579_v20 = vpop.eup %2578  ;;  %2604 = vrcp.f32 %v1624_v47  ;;  %v1623_v38 = vadd.f32 1.0, %v2577_v30 }
 0x61c   : > { %v2581_v21 = vpop.eup %2580  ;;  %1642 = vst [vmem:[%s2927_s13 + $0x8] sm:$0xff] %v2579_v20  ;;  %2606 = vrcp.f32 %v1615_v35 }
 0x61d   : > { %v2583_v49 = vpop.eup %2582  ;;  %1650 = vst [vmem:[%s2927_s13 + $0x48] sm:$0xff] %v2581_v21  ;;  %2608 = vrcp.f32 %v1623_v38 }
 0x61e   : > { %v2585_v10 = vpop.eup %2584  ;;  %1641 = vst [vmem:[%s2927_s13] sm:$0xff] %v2583_v49 }
 0x61f   : > { %v2587_v39 = vpop.eup %2586  ;;  %1649 = vst [vmem:[%s2927_s13 + $0x40] sm:$0xff] %v2585_v10 }
 0x620   : > { %v2589_v37 = vpop.eup %2588  ;;  %1644 = vst [vmem:[%s2927_s13 + $0x18] sm:$0xff] %v2587_v39 }
 0x621   : > { %v2591_v27 = vpop.eup %2590  ;;  %1652 = vst [vmem:[%s2927_s13 + $0x58] sm:$0xff] %v2589_v37 }
 0x622   : > { %v2593_v31 = vpop.eup %2592  ;;  %1643 = vst [vmem:[%s2927_s13 + $0x10] sm:$0xff] %v2591_v27 }
 0x623   : > { %v2595_v40 = vpop.eup %2594  ;;  %1651 = vst [vmem:[%s2927_s13 + $0x50] sm:$0xff] %v2593_v31 }
 0x624   : > { %v2597_v53 = vpop.eup %2596  ;;  %1646 = vst [vmem:[%s2927_s13 + $0x28] sm:$0xff] %v2595_v40 }
 0x625   : > { %v2599_v58 = vpop.eup %2598  ;;  %1654 = vst [vmem:[%s2927_s13 + $0x68] sm:$0xff] %v2597_v53 }
 0x626   : > { %v2601_v26 = vpop.eup %2600  ;;  %1645 = vst [vmem:[%s2927_s13 + $0x20] sm:$0xff] %v2599_v58 }
 0x627   : > { %v2603_v34 = vpop.eup %2602  ;;  %1653 = vst [vmem:[%s2927_s13 + $0x60] sm:$0xff] %v2601_v26 }
 0x628   : > { %v2605_v28 = vpop.eup %2604  ;;  %1648 = vst [vmem:[%s2927_s13 + $0x38] sm:$0xff] %v2603_v34 }
 0x629   : > { %v2607_v54 = vpop.eup %2606  ;;  %1656 = vst [vmem:[%s2927_s13 + $0x78] sm:$0xff] %v2605_v28 }
 0x62a   : > { %v2609_v55 = vpop.eup %2608  ;;  %1647 = vst [vmem:[%s2927_s13 + $0x30] sm:$0xff] %v2607_v54 }
 0x62b   : > { %1655 = vst [vmem:[%s2927_s13 + $0x70] sm:$0xff] %v2609_v55 }
 0x62c   : > { %2623 = shalt.err (!%p2620_p4)
}
 0x62d   : > { %s2624_s9 = scalar_lea.hbm %s3611_s12, 2048  ;;  %s2628_s20 = scalar_lea.hbm %s3665_s5, 4096 }
 0x62e   : > { %p2625_p7 = scmp.ne.s32.totalorder %s3611_s12, %s2624_s9  ;;  %p2629_p10 = scmp.lt.s32.totalorder %s3611_s12, %s3665_s5 }
 0x62f   : > { %p2630_p11 = scmp.lt.s32.totalorder %s2628_s20, %s2624_s9 }
 0x630   : > { %p2626_p8 = pnand %p2625_p7, %p2889_p5 }
 0x631   : > { %p2631_p12 = por %p2630_p11, %p2629_p10 }
 0x632   : > { %p2627_p9 = pneg %p2626_p8 }
 0x634   : > { %p2632_p13 = pnand %p2631_p12, %p2627_p9 }
 0x636   : > { %2635 = shalt.err (!%p2632_p13)
}
 0x637   : > { %s2814_s18 = smov 128   ;;  %s2815_s11 = smov 8  }
 0x638   : > { %2224 = dma.vmem_to_hbm [thread:$0]  (%p2889_p5), %s3613_s26, 2048, %s3611_s12, %s3620_s25, %s2814_s18, %s2814_s18, %s2815_s11  }
 0x639 PF: > { %p2230_p0 = scmp.ge.s32.totalorder %s2738_s24, 2  ;;  %s1694_s10 = sand.u32 1, %s2726_s21  }
 0x63a   : > { %s1695_s14 = scalar_lea.sflag [#allocation3], %s1694_s10 }
 0x63b   : > { %p2227_p1 = pnand %p2230_p0, %p2893_p6 }
 0x63d   : > { %p2228_p2 = pneg %p2227_p1 }
 0x63f   : > { %2721 = dma.done.wait (%p2228_p2), %s1695_s14, 2048  }
 0x640   : > { %2723 = vsyncadd (%p2228_p2), %s1695_s14, 4294965248  ;;  %p17_p3 = scmp.ge.s32.totalorder %s2876_s27, 4   ;;  %s3694_s21 = smov %s2730_s22 }
 0x641   : > { %s3695_s22 = smov %s2734_s23  ;;  %s3696_s23 = smov %s2887_s30 }
 0x642   : > { %s3697_s24 = smov %s2876_s27  ;;  %19 = sbr.rel (!%p17_p3) target bundleno = 3 (0x3), region = 113 }
 0x647   :  { %1708 = vsyncpa [#allocation3], 1 }
 0x648   :  { %1710 = vsyncpa [#allocation3 + $0x1], 1 }

</bundles_post_ra>
